<compile_context>
chip_gen: v7x
topology: tpu7x:2x2x1
jax: 0.10.0
libtpu: 0.0.40
codegen_flags: <defaults>
</compile_context>

<pallas_src>
import jax
import jax.numpy as jnp
import numpy as np
from jax.experimental import pallas as pl
from jax.experimental.pallas import tpu as pltpu

HIDDEN_DIM = 112
NUMCOLS_PER_SECOND = 3
NUM_CLASSES = 10
NUM_CHANNELS = 3
WIDTH = HIDDEN_DIM * NUMCOLS_PER_SECOND        # 336 image columns
FLAT = WIDTH * NUM_CHANNELS                    # 1008 = channel-interleaved lane axis


# --------------------------------------------------------------------------- #
# shared helpers
# --------------------------------------------------------------------------- #
def _pick_tb(B, row_bytes, target_bytes):
    """Batch rows per block: ~target-size block, >=2 grid steps when B>=16."""
    tb = max(1, target_bytes // row_bytes)
    if B >= 16:
        tb = min(tb, -(-B // 2))               # keep work for both v7x TensorCores
    tb = min(tb, B)
    if tb < B:
        tb = max(8, (tb // 8) * 8)             # out-block second-minor: multiple of 8
    return tb


def _fold_w2(w2, H):
    """(336, 10): col-group mean (1/3), row mean (1/H) and Linear(112,10) folded."""
    g = (np.arange(WIDTH)[:, None] // NUMCOLS_PER_SECOND
         == np.arange(HIDDEN_DIM)[None, :]).astype(np.float32)      # (336, 112)
    return jnp.asarray(g / (NUMCOLS_PER_SECOND * H)) @ w2.T         # (336, 10)


def _reference(x, rgb_w, rgb_b, w2, b2):
    """Pure-JAX mirror of the PyTorch forward (used for the one-time self-check)."""
    B, H, _, _ = x.shape
    br = jnp.tanh(x @ rgb_w.reshape(NUM_CHANNELS, 1) + rgb_b)       # (B,H,336,1)
    br = br.reshape(B, H, HIDDEN_DIM, NUMCOLS_PER_SECOND)
    feat = br.mean(-1).mean(-2)                                     # (B,112)
    return feat @ w2.T + b2                                         # (B,10)


# --------------------------------------------------------------------------- #
# fused single-pass kernel (preferred)
# --------------------------------------------------------------------------- #
def _fused_kernel(x_ref, mix_ref, gw2_ref, b2_ref, o_ref):
    # x_ref:   (TB, H, 1008) raw channel-interleaved pixels (lane p = 3*w + c)
    # mix_ref: (2, 1008)  row0 = per-lane RGB weight, row1 = rgb_bias / 3
    # gw2_ref: (1008, 10) folded means + Linear(112,10); nonzero only at lanes 3w+1
    # b2_ref:  (1, 10)
    # o_ref:   (TB, 10)
    y = x_ref[...] * mix_ref[0:1, :] + mix_ref[1:2, :]              # VPU
    # Collapse the 3 channel lanes of each pixel into the center lane 3w+1.
    # Symmetric in +/-1, so independent of the rotate sign convention; XLU slots.
    s = y + pltpu.roll(y, 1, axis=2) + pltpu.roll(y, FLAT - 1, axis=2)
    t = jnp.tanh(s)                                                 # EUP
    acc = jnp.sum(t, axis=1)                                        # (TB, 1008) sublane reduce
    o_ref[...] = (jnp.dot(acc, gw2_ref[...],
                          preferred_element_type=jnp.float32)       # MXU, non-center rows are 0
                  + b2_ref[...]).astype(o_ref.dtype)


def _forward_fused(x, rgb_w, rgb_b, w2, b2):
    B, H, W, C = x.shape
    assert W == WIDTH and C == NUM_CHANNELS
    xf = x.reshape(B, H, FLAT)                                      # free channel-minor view

    wlane = jnp.tile(rgb_w.astype(jnp.float32), WIDTH)              # (1008,) [w0,w1,w2,...]
    blane = jnp.full((FLAT,), rgb_b[0] / NUM_CHANNELS, jnp.float32)  # bias/3 so centers sum to bias
    mix = jnp.stack([wlane, blane])                                 # (2, 1008)

    gw2_336 = _fold_w2(w2, H)                                       # (336, 10)
    centers = NUM_CHANNELS * np.arange(WIDTH) + 1                   # lanes 3w+1
    gw2 = jnp.zeros((FLAT, NUM_CLASSES), jnp.float32).at[centers].set(gw2_336)
    b2row = b2.reshape(1, NUM_CLASSES).astype(jnp.float32)

    tb = _pick_tb(B, H * FLAT * 4, 2 * 1024 * 1024)                 # ~2 MiB x-block
    grid = pl.cdiv(B, tb)
    b_pad = grid * tb
    if b_pad != B:
        xf = jnp.pad(xf, ((0, b_pad - B), (0, 0), (0, 0)))          # padded rows sliced off below

    out = pl.pallas_call(
        _fused_kernel,
        out_shape=jax.ShapeDtypeStruct((b_pad, NUM_CLASSES), jnp.float32),
        grid=(grid,),
        in_specs=[
            pl.BlockSpec((tb, H, FLAT), lambda i: (i, 0, 0)),       # raw pixels
            pl.BlockSpec((2, FLAT), lambda i: (0, 0)),              # channel weights + bias/3
            pl.BlockSpec((FLAT, NUM_CLASSES), lambda i: (0, 0)),    # folded GW2
            pl.BlockSpec((1, NUM_CLASSES), lambda i: (0, 0)),       # final bias
        ],
        out_specs=pl.BlockSpec((tb, NUM_CLASSES), lambda i: (i, 0)),
        compiler_params=pltpu.CompilerParams(
            dimension_semantics=("parallel",),
            vmem_limit_bytes=32 * 1024 * 1024),
    )(xf, mix, gw2, b2row)
    return out[:B]


# --------------------------------------------------------------------------- #
# two-stage fallback (previous proven version: XLA channel mix + reduce kernel)
# --------------------------------------------------------------------------- #
def _twopass_kernel(lum_ref, gw2_ref, b2_ref, o_ref):
    br = jnp.tanh(lum_ref[...])                                     # (TB, H, 336)
    feat = jnp.sum(br, axis=1)                                      # (TB, 336)
    o_ref[...] = (jnp.dot(feat, gw2_ref[...],
                          preferred_element_type=jnp.float32)
                  + b2_ref[...]).astype(o_ref.dtype)


def _forward_twopass(x, rgb_w, rgb_b, w2, b2):
    B, H, W, C = x.shape
    lum = x @ rgb_w + rgb_b[0]                                      # (B, H, 336) fused XLA mix
    gw2 = _fold_w2(w2, H)                                           # (336, 10)
    b2row = b2.reshape(1, NUM_CLASSES).astype(jnp.float32)

    tb = _pick_tb(B, H * WIDTH * 4, 4 * 1024 * 1024)
    grid = pl.cdiv(B, tb)
    b_pad = grid * tb
    if b_pad != B:
        lum = jnp.pad(lum, ((0, b_pad - B), (0, 0), (0, 0)))

    out = pl.pallas_call(
        _twopass_kernel,
        out_shape=jax.ShapeDtypeStruct((b_pad, NUM_CLASSES), jnp.float32),
        grid=(grid,),
        in_specs=[
            pl.BlockSpec((tb, H, WIDTH), lambda i: (i, 0, 0)),
            pl.BlockSpec((WIDTH, NUM_CLASSES), lambda i: (0, 0)),
            pl.BlockSpec((1, NUM_CLASSES), lambda i: (0, 0)),
        ],
        out_specs=pl.BlockSpec((tb, NUM_CLASSES), lambda i: (i, 0)),
        compiler_params=pltpu.CompilerParams(dimension_semantics=("parallel",)),
    )(lum, gw2, b2row)
    return out[:B]


# --------------------------------------------------------------------------- #
# public forward with one-time self-check / graceful fallback
# --------------------------------------------------------------------------- #
_FUSED_OK = None


def music_dabber_forward(x, rgb_w, rgb_b, w2, b2):
    """MusicDabber forward.  Prefers the fused single-pass kernel; on first use it
    is validated (lowering + numerics) and we fall back to the two-stage variant
    if this toolchain rejects the lane-rotate pattern."""
    global _FUSED_OK
    if _FUSED_OK is None:
        try:
            out = _forward_fused(x, rgb_w, rgb_b, w2, b2)
            ref = _reference(x, rgb_w, rgb_b, w2, b2)
            _FUSED_OK = bool(jnp.allclose(out, ref, atol=1e-4, rtol=1e-4))
        except Exception:
            _FUSED_OK = False
        if _FUSED_OK:
            return out
    if _FUSED_OK:
        return _forward_fused(x, rgb_w, rgb_b, w2, b2)
    return _forward_twopass(x, rgb_w, rgb_b, w2, b2)


if __name__ == "__main__":
    key = jax.random.PRNGKey(0)
    kx, k1, k2, k3, k4 = jax.random.split(key, 5)

    B, H = 2, 8  # small batch / few image rows; width fixed to 336 by the module
    x = jax.random.normal(kx, (B, H, WIDTH, NUM_CHANNELS), dtype=jnp.float32)

    # deterministic synthetic parameters (shapes from MusicDabber.__init__)
    rgb_w = jax.random.normal(k1, (NUM_CHANNELS,), dtype=jnp.float32) * 0.5        # Linear(3,1).weight[0]
    rgb_b = jax.random.normal(k2, (1,), dtype=jnp.float32) * 0.1                   # Linear(3,1).bias
    w2 = jax.random.normal(k3, (NUM_CLASSES, HIDDEN_DIM), dtype=jnp.float32) * 0.1  # Linear(112,10).weight
    b2 = jax.random.normal(k4, (NUM_CLASSES,), dtype=jnp.float32) * 0.1             # Linear(112,10).bias

    out = jax.block_until_ready(music_dabber_forward(x, rgb_w, rgb_b, w2, b2))
    ref = _reference(x, rgb_w, rgb_b, w2, b2)

    assert out.shape == (B, NUM_CLASSES)
    np.testing.assert_allclose(np.asarray(out), np.asarray(ref), atol=1e-4, rtol=1e-4)
    print("KERNEL_OK")
</pallas_src>

<mosaic_0001>
module attributes {stable_mosaic.version = 11 : i64} {
  func.func @_fused_kernel(%arg0: i32, %arg1: memref<2x8x1008xf32, #tpu.memory_space<vmem>>, %arg2: memref<2x1008xf32, #tpu.memory_space<vmem>>, %arg3: memref<1008x10xf32, #tpu.memory_space<vmem>>, %arg4: memref<1x10xf32, #tpu.memory_space<vmem>>, %arg5: memref<2x10xf32, #tpu.memory_space<vmem>>) attributes {dimension_semantics = [#tpu.dimension_semantics<parallel>], iteration_bounds = array<i64: 1>, scalar_prefetch = 0 : i64, scratch_operands = 0 : i64, tpu.core_type = #tpu.core_type<tc>, window_params = [{transform_indices = @transform_0, window_bounds = array<i64: 2, 8, 1008>}, {pipeline_mode = #tpu.pipeline_mode<synchronous>, transform_indices = @transform_1, window_bounds = array<i64: 2, 1008>}, {pipeline_mode = #tpu.pipeline_mode<synchronous>, transform_indices = @transform_2, window_bounds = array<i64: 1008, 10>}, {pipeline_mode = #tpu.pipeline_mode<synchronous>, transform_indices = @transform_3, window_bounds = array<i64: 1, 10>}, {transform_indices = @transform_4, window_bounds = array<i64: 2, 10>}]} {
    %c0 = arith.constant 0 : index
    %c0_0 = arith.constant 0 : index
    %c0_1 = arith.constant 0 : index
    %0 = vector.load %arg1[%c0, %c0_0, %c0_1] : memref<2x8x1008xf32, #tpu.memory_space<vmem>>, vector<2x8x1008xf32>
    %c0_2 = arith.constant 0 : index
    %c0_3 = arith.constant 0 : index
    %1 = vector.load %arg2[%c0_2, %c0_3] : memref<2x1008xf32, #tpu.memory_space<vmem>>, vector<1x1008xf32>
    %2 = vector.shape_cast %1 : vector<1x1008xf32> to vector<1x1x1008xf32>
    %3 = vector.broadcast %2 : vector<1x1x1008xf32> to vector<2x8x1008xf32>
    %4 = arith.mulf %0, %3 : vector<2x8x1008xf32>
    %c1 = arith.constant 1 : index
    %c0_4 = arith.constant 0 : index
    %5 = vector.load %arg2[%c1, %c0_4] : memref<2x1008xf32, #tpu.memory_space<vmem>>, vector<1x1008xf32>
    %6 = vector.shape_cast %5 : vector<1x1008xf32> to vector<1x1x1008xf32>
    %7 = vector.broadcast %6 : vector<1x1x1008xf32> to vector<2x8x1008xf32>
    %8 = arith.addf %4, %7 : vector<2x8x1008xf32>
    %c1_i32 = arith.constant 1 : i32
    %9 = tpu.dynamic_rotate %8 by %c1_i32 dim 2 : vector<2x8x1008xf32>, i32 -> vector<2x8x1008xf32>
    %10 = arith.addf %8, %9 : vector<2x8x1008xf32>
    %c1007_i32 = arith.constant 1007 : i32
    %11 = tpu.dynamic_rotate %8 by %c1007_i32 dim 2 : vector<2x8x1008xf32>, i32 -> vector<2x8x1008xf32>
    %12 = arith.addf %10, %11 : vector<2x8x1008xf32>
    %13 = math.tanh %12 : vector<2x8x1008xf32>
    %cst = arith.constant dense<0.000000e+00> : vector<2x1008xf32>
    %14 = vector.multi_reduction <add>, %13, %cst [1] : vector<2x8x1008xf32> to vector<2x1008xf32>
    %c0_5 = arith.constant 0 : index
    %c0_6 = arith.constant 0 : index
    %15 = vector.load %arg3[%c0_5, %c0_6] : memref<1008x10xf32, #tpu.memory_space<vmem>>, vector<1008x10xf32>
    %cst_7 = arith.constant dense<0.000000e+00> : vector<2x10xf32>
    %16 = tpu.matmul %14, %15, %cst_7 {dimension_numbers = #tpu.dot_dimension_numbers<[1], [0], [0], [1], [0, 0, 1, 1], [], []>} : vector<2x1008xf32>, vector<1008x10xf32>, vector<2x10xf32> -> vector<2x10xf32>
    %c0_8 = arith.constant 0 : index
    %c0_9 = arith.constant 0 : index
    %17 = vector.load %arg4[%c0_8, %c0_9] : memref<1x10xf32, #tpu.memory_space<vmem>>, vector<1x10xf32>
    %18 = vector.broadcast %17 : vector<1x10xf32> to vector<2x10xf32>
    %19 = arith.addf %16, %18 : vector<2x10xf32>
    %c0_10 = arith.constant 0 : index
    %c0_11 = arith.constant 0 : index
    %20 = vector.load %arg5[%c0_10, %c0_11] : memref<2x10xf32, #tpu.memory_space<vmem>>, vector<2x10xf32>
    tpu.vector_store %arg5[%c0_10, %c0_11], %19 {strides = array<i32>} : memref<2x10xf32, #tpu.memory_space<vmem>>, vector<2x10xf32>,
    return
  }
  func.func @transform_0(%arg0: i32) -> (i32, i32, i32) {
    %c0_i32 = arith.constant 0 : i32
    %c0_i32_0 = arith.constant 0 : i32
    %c0_i32_1 = arith.constant 0 : i32
    return %arg0, %c0_i32, %c0_i32_0 : i32, i32, i32
  }
  func.func @transform_1(%arg0: i32) -> (i32, i32) {
    %c0_i32 = arith.constant 0 : i32
    %c0_i32_0 = arith.constant 0 : i32
    %c0_i32_1 = arith.constant 0 : i32
    return %c0_i32, %c0_i32_0 : i32, i32
  }
  func.func @transform_2(%arg0: i32) -> (i32, i32) {
    %c0_i32 = arith.constant 0 : i32
    %c0_i32_0 = arith.constant 0 : i32
    %c0_i32_1 = arith.constant 0 : i32
    return %c0_i32, %c0_i32_0 : i32, i32
  }
  func.func @transform_3(%arg0: i32) -> (i32, i32) {
    %c0_i32 = arith.constant 0 : i32
    %c0_i32_0 = arith.constant 0 : i32
    %c0_i32_1 = arith.constant 0 : i32
    return %c0_i32, %c0_i32_0 : i32, i32
  }
  func.func @transform_4(%arg0: i32) -> (i32, i32) {
    %c0_i32 = arith.constant 0 : i32
    %c0_i32_0 = arith.constant 0 : i32
    return %arg0, %c0_i32 : i32, i32
  }
}

module attributes {stable_mosaic.version = 11 : i64} {
  func.func @_twopass_kernel(%arg0: i32, %arg1: memref<2x8x336xf32, #tpu.memory_space<vmem>>, %arg2: memref<336x10xf32, #tpu.memory_space<vmem>>, %arg3: memref<1x10xf32, #tpu.memory_space<vmem>>, %arg4: memref<2x10xf32, #tpu.memory_space<vmem>>) attributes {dimension_semantics = [#tpu.dimension_semantics<parallel>], iteration_bounds = array<i64: 1>, scalar_prefetch = 0 : i64, scratch_operands = 0 : i64, tpu.core_type = #tpu.core_type<tc>, window_params = [{transform_indices = @transform_0, window_bounds = array<i64: 2, 8, 336>}, {pipeline_mode = #tpu.pipeline_mode<synchronous>, transform_indices = @transform_1, window_bounds = array<i64: 336, 10>}, {pipeline_mode = #tpu.pipeline_mode<synchronous>, transform_indices = @transform_2, window_bounds = array<i64: 1, 10>}, {transform_indices = @transform_3, window_bounds = array<i64: 2, 10>}]} {
    %c0 = arith.constant 0 : index
    %c0_0 = arith.constant 0 : index
    %c0_1 = arith.constant 0 : index
    %0 = vector.load %arg1[%c0, %c0_0, %c0_1] : memref<2x8x336xf32, #tpu.memory_space<vmem>>, vector<2x8x336xf32>
    %1 = math.tanh %0 : vector<2x8x336xf32>
    %cst = arith.constant dense<0.000000e+00> : vector<2x336xf32>
    %2 = vector.multi_reduction <add>, %1, %cst [1] : vector<2x8x336xf32> to vector<2x336xf32>
    %c0_2 = arith.constant 0 : index
    %c0_3 = arith.constant 0 : index
    %3 = vector.load %arg2[%c0_2, %c0_3] : memref<336x10xf32, #tpu.memory_space<vmem>>, vector<336x10xf32>
    %cst_4 = arith.constant dense<0.000000e+00> : vector<2x10xf32>
    %4 = tpu.matmul %2, %3, %cst_4 {dimension_numbers = #tpu.dot_dimension_numbers<[1], [0], [0], [1], [0, 0, 1, 1], [], []>} : vector<2x336xf32>, vector<336x10xf32>, vector<2x10xf32> -> vector<2x10xf32>
    %c0_5 = arith.constant 0 : index
    %c0_6 = arith.constant 0 : index
    %5 = vector.load %arg3[%c0_5, %c0_6] : memref<1x10xf32, #tpu.memory_space<vmem>>, vector<1x10xf32>
    %6 = vector.broadcast %5 : vector<1x10xf32> to vector<2x10xf32>
    %7 = arith.addf %4, %6 : vector<2x10xf32>
    %c0_7 = arith.constant 0 : index
    %c0_8 = arith.constant 0 : index
    %8 = vector.load %arg4[%c0_7, %c0_8] : memref<2x10xf32, #tpu.memory_space<vmem>>, vector<2x10xf32>
    tpu.vector_store %arg4[%c0_7, %c0_8], %7 {strides = array<i32>} : memref<2x10xf32, #tpu.memory_space<vmem>>, vector<2x10xf32>,
    return
  }
  func.func @transform_0(%arg0: i32) -> (i32, i32, i32) {
    %c0_i32 = arith.constant 0 : i32
    %c0_i32_0 = arith.constant 0 : i32
    %c0_i32_1 = arith.constant 0 : i32
    return %arg0, %c0_i32, %c0_i32_0 : i32, i32, i32
  }
  func.func @transform_1(%arg0: i32) -> (i32, i32) {
    %c0_i32 = arith.constant 0 : i32
    %c0_i32_0 = arith.constant 0 : i32
    %c0_i32_1 = arith.constant 0 : i32
    return %c0_i32, %c0_i32_0 : i32, i32
  }
  func.func @transform_2(%arg0: i32) -> (i32, i32) {
    %c0_i32 = arith.constant 0 : i32
    %c0_i32_0 = arith.constant 0 : i32
    %c0_i32_1 = arith.constant 0 : i32
    return %c0_i32, %c0_i32_0 : i32, i32
  }
  func.func @transform_3(%arg0: i32) -> (i32, i32) {
    %c0_i32 = arith.constant 0 : i32
    %c0_i32_0 = arith.constant 0 : i32
    return %arg0, %c0_i32 : i32, i32
  }
}

</mosaic_0001>

<bundles_post_ra>
// kernel: tpu_custom_call.1
= control target key start
LH: loop header
LB: loop body
LE: loop exit
PB: predicated region body
PF: predicated region fallthrough
CT: control target
= control target key end

     0   :  { %v36_v0 = vlaneseq  ;;  %s2057_s0 = inlined_call_operand.vmem [shape: f32[2,8,1008], index: 0, kind: input, shape index: {}]   ;;  %s2058_s1 = inlined_call_operand.vmem [shape: f32[2,1008], index: 1, kind: input, shape index: {}]   ;;  %s2059_s2 = inlined_call_operand.vmem [shape: f32[1008,10], index: 2, kind: input, shape index: {}]   ;;  %s2060_s3 = inlined_call_operand.vmem [shape: f32[1,10], index: 3, kind: input, shape index: {}]   ;;  %s2061_s4 = inlined_call_operand.hbm [shape: f32[2,10], index: 4, kind: output, shape index: {}]  }
   0x1   :  { %v1319_v2 = vld [vmem:[%s2058_s1] ss:$2 sm:$0xff]  ;;  %v1324_v3 = vld [vmem:[%s2058_s1 + $0x1] ss:$2 sm:$0xff]  ;;  %v20_v4 = vld [vmem:[%s2057_s0 + $0x10] sm:$0xff] }
   0x2   :  { %v1314_v1 = vshrl.u32 %v36_v0, 7  ;;  %v18_v8 = vld [vmem:[%s2057_s0] sm:$0xff]  ;;  %v28_v9 = vld [vmem:[%s2057_s0 + $0x50] sm:$0xff] }
   0x3   :  { %v26_v10 = vld [vmem:[%s2057_s0 + $0x40] sm:$0xff] }
   0x4   :  { %v46_v5 = vsub.s32 2, %v1314_v1  ;;  %v38_v6 = vsub.s32 0, %v1314_v1  ;;  %v50_v7 = vsub.s32 3, %v1314_v1  ;;  %v54_v11 = vsub.s32 4, %v1314_v1 }
   0x6   :  { %v47_v12 = vrot.slane %v1319_v2, %v46_v5  ;;  %v106_v13 = vrot.slane %v1324_v3, %v46_v5  ;;  %v39_v14 = vrot.slane %v1319_v2, %v38_v6  ;;  %v98_v15 = vrot.slane %v1324_v3, %v38_v6 }
   0x7   :  { %9 = vsyncpa [#allocation3], 0  ;;  %v51_v16 = vrot.slane %v1319_v2, %v50_v7  ;;  %v29_v21 = vld [vmem:[%s2057_s0 + $0x58] sm:$0xff]  ;;  %v55_v25 = vrot.slane %v1319_v2, %v54_v11  ;;  %v110_v27 = vrot.slane %v1324_v3, %v50_v7  ;;  %v30_v28 = vld [vmem:[%s2057_s0 + $0x60] sm:$0xff]  ;;  %v42_v29 = vsub.s32 1, %v1314_v1  ;;  %s1284_s6 = smov 112  }
   0x8   :  { %v78_v17 = vmul.f32 %v47_v12, %v20_v4  ;;  %v76_v18 = vmul.f32 %v39_v14, %v18_v8  ;;  %v86_v19 = vmul.f32 %v47_v12, %v28_v9  ;;  %v84_v20 = vmul.f32 %v39_v14, %v26_v10  ;;  %v21_v22 = vld [vmem:[%s2057_s0 + $0x18] sm:$0xff]  ;;  %v22_v33 = vld [vmem:[%s2057_s0 + $0x20] sm:$0xff]  ;;  %v27_v46 = vld [vmem:[%s2057_s0 + $0x48] sm:$0xff]  ;;  %s1286_s10 = smov 17   ;;  %s1288_s8 = smov [#allocation2]  }
   0x9   :  { %v87_v26 = vmul.f32 %v51_v16, %v29_v21  ;;  %v79_v32 = vmul.f32 %v51_v16, %v21_v22  ;;  %v66_v34 = vsub.s32 7, %v1314_v1  ;;  %v88_v35 = vmul.f32 %v55_v25, %v30_v28  ;;  %v25_v37 = vld [vmem:[%s2057_s0 + $0x38] sm:$0xff]  ;;  %v19_v47 = vld [vmem:[%s2057_s0 + $0x8] sm:$0xff]  ;;  %v24_v5 = vld [vmem:[%s2057_s0 + $0x30] sm:$0xff] }
   0xa   :  { %v1353_v23 = vadd.f32 %v106_v13, %v78_v17  ;;  %v1355_v24 = vadd.f32 %v98_v15, %v76_v18  ;;  %v1367_v30 = vadd.f32 %v106_v13, %v86_v19  ;;  %v1369_v31 = vadd.f32 %v98_v15, %v84_v20  ;;  %v33_v42 = vld [vmem:[%s2057_s0 + $0x78] sm:$0xff]  ;;  %v23_v58 = vld [vmem:[%s2057_s0 + $0x28] sm:$0xff]  ;;  %v32_v6 = vld [vmem:[%s2057_s0 + $0x70] sm:$0xff] }
   0xb   :  { %v114_v36 = vrot.slane %v1324_v3, %v54_v11  ;;  %v80_v38 = vmul.f32 %v55_v25, %v22_v33  ;;  %v58_v39 = vsub.s32 5, %v1314_v1  ;;  %v67_v40 = vrot.slane %v1319_v2, %v66_v34  ;;  %v31_v60 = vld [vmem:[%s2057_s0 + $0x68] sm:$0xff]  ;;  %s1285_s0 = smov 127   ;;  %v559_v18 = vld [vmem:[%s2059_s2 + $0x180] sm:$0xff] }
   0xc   :  { %162 = vrot.lane.b32.xlu1 %v1353_v23, %s1284_s6  ;;  %152 = vrot.lane.b32.xlu0 %v1355_v24, %s1284_s6  ;;  %v126_v41 = vrot.slane %v1324_v3, %v66_v34  ;;  %v1389_v43 = vadd.f32 %v110_v27, %v87_v26  ;;  %v1391_v44 = vadd.f32 %v110_v27, %v79_v32  ;;  %v62_v50 = vsub.s32 6, %v1314_v1  ;;  %v560_v19 = vld [vmem:[%s2059_s2 + $0x188] sm:$0xff]  ;;  %v543_v21 = vld [vmem:[%s2059_s2 + $0x100] sm:$0xff] }
   0xd   :  { %v43_v45 = vrot.slane %v1319_v2, %v42_v29  ;;  %v83_v48 = vmul.f32 %v67_v40, %v25_v37  ;;  %v1400_v49 = vadd.f32 %v114_v36, %v88_v35  ;;  %v91_v51 = vmul.f32 %v67_v40, %v33_v42  ;;  %v544_v22 = vld [vmem:[%s2059_s2 + $0x108] sm:$0xff]  ;;  %v562_v32 = vld [vmem:[%s2059_s2 + $0x198] sm:$0xff]  ;;  %v545_v34 = vld [vmem:[%s2059_s2 + $0x110] sm:$0xff] }
   0xe   :  { %v1403_v52 = vadd.f32 %v114_v36, %v80_v38  ;;  %v102_v53 = vrot.slane %v1324_v3, %v42_v29  ;;  %v59_v54 = vrot.slane %v1319_v2, %v58_v39  ;;  %v118_v62 = vrot.slane %v1324_v3, %v58_v39  ;;  %v561_v29 = vld [vmem:[%s2059_s2 + $0x190] sm:$0xff]  ;;  %v546_v35 = vld [vmem:[%s2059_s2 + $0x118] sm:$0xff]  ;;  %v564_v42 = vld [vmem:[%s2059_s2 + $0x1a8] sm:$0xff] }
   0xf   :  { %v1407_v55 = vadd.f32 %v126_v41, %v83_v48  ;;  %v85_v56 = vmul.f32 %v43_v45, %v27_v46  ;;  %v77_v57 = vmul.f32 %v43_v45, %v19_v47  ;;  %v1416_v59 = vadd.f32 %v126_v41, %v91_v51  ;;  %v563_v41 = vld [vmem:[%s2059_s2 + $0x1a0] sm:$0xff]  ;;  %v548_v47 = vld [vmem:[%s2059_s2 + $0x128] sm:$0xff] }
  0x10   :  { %164 = vrot.lane.b32.xlu1 %v1367_v30, %s1284_s6  ;;  %155 = vrot.lane.b32.xlu0 %v1369_v31, %s1284_s6  ;;  %v81_v61 = vmul.f32 %v59_v54, %v23_v58  ;;  %v63_v63 = vrot.slane %v1319_v2, %v62_v50  ;;  %v89_v4 = vmul.f32 %v59_v54, %v31_v60  ;;  %vm151_vm0 = vcmask 1048448   ;;  %v547_v46 = vld [vmem:[%s2059_s2 + $0x120] sm:$0xff]  ;;  %v565_v54 = vld [vmem:[%s2059_s2 + $0x1b0] sm:$0xff] }
  0x11   :  { %v1427_v0 = vadd.f32 %v102_v53, %v85_v56  ;;  %v1429_v1 = vadd.f32 %v102_v53, %v77_v57  ;;  %v122_v7 = vrot.slane %v1324_v3, %v62_v50  ;;  %v1114_v20 = vpack.c.bf16 %v560_v19, %v559_v18  ;;  %v566_v56 = vld [vmem:[%s2059_s2 + $0x1b8] sm:$0xff]  ;;  %v549_v60 = vld [vmem:[%s2059_s2 + $0x130] sm:$0xff]  ;;  %v551_v18 = vld [vmem:[%s2059_s2 + $0x140] sm:$0xff] }
  0x12   :  { %v82_v2 = vmul.f32 %v63_v63, %v24_v5  ;;  %v1442_v8 = vadd.f32 %v118_v62, %v81_v61  ;;  %v1444_v9 = vadd.f32 %v118_v62, %v89_v4  ;;  %v90_v10 = vmul.f32 %v63_v63, %v32_v6  ;;  %v550_v61 = vld [vmem:[%s2059_s2 + $0x138] sm:$0xff]  ;;  %v527_v4 = vld [vmem:[%s2059_s2 + $0x80] sm:$0xff]  ;;  %v528_v5 = vld [vmem:[%s2059_s2 + $0x88] sm:$0xff] }
  0x13   :  { %v1116_v25 = vpack.c.bf16 %v544_v22, %v543_v21  ;;  %1115 = vmatprep.subr.bf16.mxu1 %v1114_v20  ;;  %v1118_v33 = vpack.c.bf16 %v562_v32, %v561_v29  ;;  %v1120_v37 = vpack.c.bf16 %v546_v35, %v545_v34  ;;  %v1122_v45 = vpack.c.bf16 %v564_v42, %v563_v41  ;;  %v552_v20 = vld [vmem:[%s2059_s2 + $0x148] sm:$0xff]  ;;  %v529_v22 = vld [vmem:[%s2059_s2 + $0x90] sm:$0xff] }
  0x14   :  { %168 = vrot.lane.b32.xlu1 %v1389_v43, %s1284_s6  ;;  %166 = vrot.lane.b32.xlu0 %v1391_v44, %s1284_s6  ;;  %v1450_v11 = vadd.f32 %v122_v7, %v82_v2  ;;  %v1452_v3 = vadd.f32 %v122_v7, %v90_v10  ;;  %v1124_v50 = vpack.c.bf16 %v548_v47, %v547_v46  ;;  %v511_v2 = vld [vmem:[%s2059_s2] sm:$0xff]  ;;  %v512_v7 = vld [vmem:[%s2059_s2 + $0x8] sm:$0xff]  ;;  %vm254_vm1 = vcmask 138240  }
  0x15   :  { %1117 = vmatpush3.bf16.msra.mxu1 %v1116_v25  ;;  %v1126_v58 = vpack.c.bf16 %v566_v56, %v565_v54  ;;  %v1128_v63 = vpack.c.bf16 %v550_v61, %v549_v60  ;;  %v1082_v6 = vpack.c.bf16 %v528_v5, %v527_v4  ;;  %v567_v10 = vld [vmem:[%s2059_s2 + $0x1c0] sm:$0xff]  ;;  %v1132_v21 = vpack.c.bf16 %v552_v20, %v551_v18  ;;  %v530_v25 = vld [vmem:[%s2059_s2 + $0x98] sm:$0xff]  ;;  %v569_v29 = vld [vmem:[%s2059_s2 + $0x1d0] sm:$0xff] }
  0x16   :  { %1119 = vmatprep.subr.bf16.mxu1 %v1118_v33  ;;  %v570_v33 = vld [vmem:[%s2059_s2 + $0x1d8] sm:$0xff]  ;;  %v553_v34 = vld [vmem:[%s2059_s2 + $0x150] sm:$0xff]  ;;  %v532_v41 = vld [vmem:[%s2059_s2 + $0xa8] sm:$0xff]  ;;  %vm349_vm2 = vcmask 1039360   ;;  %vm660_vm3 = vcmask 1041409   ;;  %vm454_vm4 = vcmask 916480  }
  0x17   :  { %1083 = vmatprep.subr.bf16.mxu0 %v1082_v6  ;;  %v1134_v35 = vpack.c.bf16 %v570_v33, %v569_v29  ;;  %v515_v46 = vld [vmem:[%s2059_s2 + $0x20] sm:$0xff]  ;;  %v516_v47 = vld [vmem:[%s2059_s2 + $0x28] sm:$0xff]  ;;  %v534_v60 = vld [vmem:[%s2059_s2 + $0xb8] sm:$0xff]  ;;  %vm958_vm5 = vcmask 74752  }
  0x18   :  { %172 = vrot.lane.b32.xlu1 %v1400_v49, %s1284_s6  ;;  %170 = vrot.lane.b32.xlu0 %v1403_v52, %s1284_s6  ;;  %v556_v54 = vld [vmem:[%s2059_s2 + $0x168] sm:$0xff]  ;;  %v518_v4 = vld [vmem:[%s2059_s2 + $0x38] sm:$0xff] }
  0x19   :  { %1121 = vmatpush3.bf16.msra.mxu1 %v1120_v37  ;;  %v573_v5 = vld [vmem:[%s2059_s2 + $0x1f0] sm:$0xff]  ;;  %v520_v20 = vld [vmem:[%s2059_s2 + $0x48] sm:$0xff]  ;;  %v522_v29 = vld [vmem:[%s2059_s2 + $0x58] sm:$0xff] }
  0x1a   :  { %1123 = vmatprep.subr.bf16.mxu1 %v1122_v45  ;;  %v557_v6 = vld [vmem:[%s2059_s2 + $0x170] sm:$0xff]  ;;  %v539_v33 = vld [vmem:[%s2059_s2 + $0xe0] sm:$0xff] }
  0x1c   :  { %160 = vrot.lane.b32.xlu1 %v1427_v0, %s1284_s6  ;;  %158 = vrot.lane.b32.xlu0 %v1429_v1, %s1284_s6 }
  0x1d   :  { %1125 = vmatpush3.bf16.msra.mxu1 %v1124_v50  ;;  %v572_v50 = vld [vmem:[%s2059_s2 + $0x1e8] sm:$0xff] }
  0x1e   :  { %1127 = vmatprep.subr.bf16.mxu1 %v1126_v58  ;;  %v533_v58 = vld [vmem:[%s2059_s2 + $0xb0] sm:$0xff] }
  0x20   :  { %174 = vrot.lane.b32.xlu0 %v1442_v8, %s1284_s6  ;;  %176 = vrot.lane.b32.xlu1 %v1444_v9, %s1284_s6 }
  0x21   :  { %1129 = vmatpush3.bf16.msra.mxu1 %v1128_v63  ;;  %v517_v63 = vld [vmem:[%s2059_s2 + $0x30] sm:$0xff] }
  0x24   :  { %178 = vrot.lane.b32.xlu0 %v1450_v11, %s1284_s6  ;;  %180 = vrot.lane.b32.xlu1 %v1452_v3, %s1284_s6 }
  0x28   :  { %325 = vrot.lane.b32.xlu1 %v1403_v52, %s1285_s0  ;;  %323 = vrot.lane.b32.xlu0 %v1391_v44, %s1285_s0 }
  0x2c   :  { %341 = vrot.lane.b32.xlu1 %v1400_v49, %s1285_s0  ;;  %339 = vrot.lane.b32.xlu0 %v1389_v43, %s1285_s0 }
  0x7e   :  { %v163_v12 = vpop.permute.xlu1 %162  ;;  %v1466_v13 = vpop.permute.xlu0 %152 }
  0x7f   :  { %v1471_v14 = vsel %vm151_vm0, %v1466_v13, %v1407_v55 }
  0x80   :  { %182 = vrot.lane.b32.xlu0 %v1471_v14, %s1284_s6 }
  0x82   :  { %v165_v15 = vpop.permute.xlu1 %164  ;;  %v1475_v16 = vpop.permute.xlu0 %155 }
  0x83   :  { %v1480_v17 = vsel %vm151_vm0, %v1475_v16, %v1416_v59 }
  0x84   :  { %184 = vrot.lane.b32.xlu1 %v1480_v17, %s1284_s6  ;;  %s966_s6 = sshll.u32 %s1288_s8, 4  ;;  %s967_s6 = int_to_ptr.vmem [resolvable:$true] %s966_s6 }
  0x85   :  { %s1260_s9 = scalar_lea.vmem %s967_s6, 32  ;;  %p1265_p1 = scmp.lt.s32.totalorder %s967_s6, %s967_s6 }
  0x86   :  { %v169_v26 = vpop.permute.xlu1 %168  ;;  %v167_v27 = vpop.permute.xlu0 %166  ;;  %p1261_p0 = scmp.ne.s32.totalorder %s967_s6, %s1260_s9  ;;  %p1266_p2 = scmp.lt.s32.totalorder %s1260_s9, %s1260_s9 }
  0x87   :  { %v190_v28 = vsel %vm151_vm0, %v167_v27, %v163_v12  ;;  %v191_v36 = vsel %vm151_vm0, %v169_v26, %v165_v15 }
  0x88   :  { %224 = vrot.lane.b32.xlu0 %v190_v28, %s1286_s10  ;;  %v514_v28 = vld [vmem:[%s2059_s2 + $0x18] sm:$0xff]  ;;  %p1267_p3 = por %p1266_p2, %p1265_p1 }
  0x8a   :  { %v1511_v38 = vpop.permute.xlu1 %172  ;;  %v1513_v39 = vpop.permute.xlu0 %170  ;;  %p1268_p4 = pnand %p1267_p3, %p1261_p0 }
  0x8b   :  { %v192_v40 = vsel %vm151_vm0, %v1513_v39, %v167_v27  ;;  %v193_v48 = vsel %vm151_vm0, %v1511_v38, %v169_v26  ;;  %v1086_v26 = vpack.c.bf16 %v530_v25, %v529_v22  ;;  %v513_v27 = vld [vmem:[%s2059_s2 + $0x10] sm:$0xff]  ;;  %v538_v25 = vld [vmem:[%s2059_s2 + $0xd8] sm:$0xff] }
  0x8c   :  { %242 = vrot.lane.b32.xlu0 %v191_v36, %s1286_s10  ;;  %226 = vrot.lane.b32.xlu1 %v192_v40, %s1286_s10  ;;  %v1088_v32 = vpack.c.bf16 %v514_v28, %v513_v27  ;;  %v554_v36 = vld [vmem:[%s2059_s2 + $0x158] sm:$0xff]  ;;  %v531_v40 = vld [vmem:[%s2059_s2 + $0xa0] sm:$0xff] }
  0x8d   :  { %v1136_v37 = vpack.c.bf16 %v554_v36, %v553_v34  ;;  %v1090_v45 = vpack.c.bf16 %v532_v41, %v531_v40  ;;  %v537_v22 = vld [vmem:[%s2059_s2 + $0xd0] sm:$0xff]  ;;  %v540_v34 = vld [vmem:[%s2059_s2 + $0xe8] sm:$0xff] }
  0x8e   :  { %v159_v51 = vpop.permute.xlu0 %158  ;;  %v1540_v57 = vpop.permute.xlu1 %160  ;;  %v1102_v27 = vpack.c.bf16 %v538_v25, %v537_v22  ;;  %v521_v28 = vld [vmem:[%s2059_s2 + $0x50] sm:$0xff]  ;;  %v1106_v36 = vpack.c.bf16 %v540_v34, %v539_v33  ;;  %v524_v40 = vld [vmem:[%s2059_s2 + $0x68] sm:$0xff] }
  0x8f   :  { %v188_v53 = vsel %vm151_vm0, %v163_v12, %v159_v51  ;;  %v189_v62 = vsel %vm151_vm0, %v165_v15, %v1540_v57  ;;  %v1084_v12 = vpack.c.bf16 %v512_v7, %v511_v2  ;;  %v568_v15 = vld [vmem:[%s2059_s2 + $0x1c8] sm:$0xff]  ;;  %v186_v42 = vsel %vm151_vm0, %v159_v51, %v1466_v13  ;;  %v555_v51 = vld [vmem:[%s2059_s2 + $0x160] sm:$0xff]  ;;  %v558_v7 = vld [vmem:[%s2059_s2 + $0x178] sm:$0xff] }
  0x90   :  { %244 = vrot.lane.b32.xlu1 %v193_v48, %s1286_s10  ;;  %222 = vrot.lane.b32.xlu0 %v188_v53, %s1286_s10  ;;  %v1130_v19 = vpack.c.bf16 %v568_v15, %v567_v10  ;;  %v571_v48 = vld [vmem:[%s2059_s2 + $0x1e0] sm:$0xff]  ;;  %v1092_v13 = vpack.c.bf16 %v516_v47, %v515_v46  ;;  %v1140_v56 = vpack.c.bf16 %v556_v54, %v555_v51  ;;  %v536_v15 = vld [vmem:[%s2059_s2 + $0xc8] sm:$0xff] }
  0x91   :  { %1085 = vmatpush3.bf16.msra.mxu0 %v1084_v12  ;;  %v1138_v53 = vpack.c.bf16 %v572_v50, %v571_v48  ;;  %v187_v61 = vsel %vm151_vm0, %v1540_v57, %v1475_v16  ;;  %v1096_v16 = vpack.c.bf16 %v518_v4, %v517_v63  ;;  %v574_v57 = vld [vmem:[%s2059_s2 + $0x1f8] sm:$0xff]  ;;  %v1144_v10 = vpack.c.bf16 %v558_v7, %v557_v6  ;;  %v535_v12 = vld [vmem:[%s2059_s2 + $0xc0] sm:$0xff]  ;;  %v541_v46 = vld [vmem:[%s2059_s2 + $0xf0] sm:$0xff] }
  0x92   :  { %1131 = vmatprep.subr.bf16.mxu1 %v1130_v19  ;;  %1087 = vmatprep.subr.bf16.mxu0 %v1086_v26  ;;  %v1142_v2 = vpack.c.bf16 %v574_v57, %v573_v5  ;;  %v1098_v18 = vpack.c.bf16 %v536_v15, %v535_v12  ;;  %v519_v19 = vld [vmem:[%s2059_s2 + $0x40] sm:$0xff]  ;;  %v175_v26 = vpop.permute.xlu0 %174  ;;  %v542_v47 = vld [vmem:[%s2059_s2 + $0xf8] sm:$0xff] }
  0x93   :  { %1133 = vmatpush3.bf16.msra.mxu1 %v1132_v21  ;;  %v1100_v21 = vpack.c.bf16 %v520_v20, %v519_v19  ;;  %v194_v41 = vsel %vm151_vm0, %v175_v26, %v1513_v39  ;;  %v1110_v48 = vpack.c.bf16 %v542_v47, %v541_v46  ;;  %v525_v39 = vld [vmem:[%s2059_s2 + $0x70] sm:$0xff]  ;;  %v591_v54 = vld [vmem:[%s2059_s2 + $0x280] sm:$0xff] }
  0x94   :  { %240 = vrot.lane.b32.xlu1 %v189_v62, %s1286_s10  ;;  %321 = vrot.lane.b32.xlu0 %v1353_v23, %s1285_s0  ;;  %v1094_v62 = vpack.c.bf16 %v534_v60, %v533_v58 }
  0x95   :  { %1089 = vmatpush3.bf16.msra.mxu0 %v1088_v32  ;;  %1135 = vmatprep.subr.bf16.mxu1 %v1134_v35  ;;  %v1104_v32 = vpack.c.bf16 %v522_v29, %v521_v28  ;;  %v177_v35 = vpop.permute.xlu1 %176 }
  0x96   :  { %1091 = vmatprep.subr.bf16.mxu0 %v1090_v45  ;;  %v179_v45 = vpop.permute.xlu0 %178  ;;  %v195_v50 = vsel %vm151_vm0, %v177_v35, %v1511_v38 }
  0x97   :  { %1137 = vmatpush3.bf16.msra.mxu1 %v1136_v37  ;;  %v523_v37 = vld [vmem:[%s2059_s2 + $0x60] sm:$0xff]  ;;  %v196_v51 = vsel %vm151_vm0, %v179_v45, %v175_v26 }
  0x98   :  { %337 = vrot.lane.b32.xlu1 %v1367_v30, %s1285_s0  ;;  %319 = vrot.lane.b32.xlu0 %v1429_v1, %s1285_s0 }
  0x99   :  { %1093 = vmatpush3.bf16.msra.mxu0 %v1092_v13  ;;  %1139 = vmatprep.subr.bf16.mxu1 %v1138_v53  ;;  %v526_v13 = vld [vmem:[%s2059_s2 + $0x78] sm:$0xff]  ;;  %v181_v58 = vpop.permute.xlu1 %180 }
  0x9a   :  { %1095 = vmatprep.subr.bf16.mxu0 %v1094_v62  ;;  %v1112_v53 = vpack.c.bf16 %v526_v13, %v525_v39  ;;  %v197_v38 = vsel %vm151_vm0, %v181_v58, %v177_v35  ;;  %v324_v62 = vpop.permute.xlu0 %323 }
  0x9b   :  { %1141 = vmatpush3.bf16.msra.mxu1 %v1140_v56  ;;  %v592_v56 = vld [vmem:[%s2059_s2 + $0x288] sm:$0xff] }
  0x9c   :  { %335 = vrot.lane.b32.xlu1 %v1427_v0, %s1285_s0  ;;  %220 = vrot.lane.b32.xlu0 %v186_v42, %s1286_s10  ;;  %v1108_v42 = vpack.c.bf16 %v524_v40, %v523_v37  ;;  %v1146_v60 = vpack.c.bf16 %v592_v56, %v591_v54 }
  0x9d   :  { %1097 = vmatpush3.bf16.msra.mxu0 %v1096_v16  ;;  %1143 = vmatprep.subr.bf16.mxu1 %v1142_v2  ;;  %v1745_v63 = vpop.permute.xlu1 %325 }
  0x9e   :  { %1099 = vmatprep.subr.bf16.mxu0 %v1098_v18  ;;  %v340_v4 = vpop.permute.xlu0 %339  ;;  %v353_v19 = vsel %vm349_vm2, %v324_v62, %v1745_v63 }
  0x9f   :  { %1145 = vmatpush3.bf16.msra.mxu1 %v1144_v10 }
  0xa0   :  { %238 = vrot.lane.b32.xlu1 %v187_v61, %s1286_s10  ;;  %218 = vrot.lane.b32.xlu0 %v1471_v14, %s1286_s10  ;;  %v1287_v61 = vmov 0.0|0.0  }
  0xa1   :  { %1101 = vmatpush3.bf16.msra.mxu0 %v1100_v21  ;;  %1178 = vmatprep.subr.bf16.mxu1 %v1287_v61  ;;  %v1747_v5 = vpop.permute.xlu1 %341 }
  0xa2   :  { %1103 = vmatprep.subr.bf16.mxu0 %v1102_v27 }
  0xa4   :  { %236 = vrot.lane.b32.xlu1 %v1480_v17, %s1286_s10  ;;  %317 = vrot.lane.b32.xlu0 %v1355_v24, %s1285_s0 }
  0xa5   :  { %1105 = vmatpush3.bf16.msra.mxu0 %v1104_v32 }
  0xa6   :  { %1107 = vmatprep.subr.bf16.mxu0 %v1106_v36 }
  0xa8   :  { %333 = vrot.lane.b32.xlu1 %v1369_v31, %s1285_s0  ;;  %327 = vrot.lane.b32.xlu0 %v1442_v8, %s1285_s0 }
  0xa9   :  { %1109 = vmatpush3.bf16.msra.mxu0 %v1108_v42 }
  0xaa   :  { %1111 = vmatprep.subr.bf16.mxu0 %v1110_v48 }
  0xac   :  { %329 = vrot.lane.b32.xlu1 %v1450_v11, %s1285_s0  ;;  %343 = vrot.lane.b32.xlu0 %v1444_v9, %s1285_s0 }
  0xad   :  { %1113 = vmatpush3.bf16.msra.mxu0 %v1112_v53 }
  0xae   :  { %1147 = vmatprep.subr.bf16.mxu0 %v1146_v60 }
  0xb0   :  { %345 = vrot.lane.b32.xlu1 %v1452_v3, %s1285_s0  ;;  %228 = vrot.lane.b32.xlu0 %v194_v41, %s1286_s10 }
  0xb4   :  { %246 = vrot.lane.b32.xlu0 %v195_v50, %s1286_s10  ;;  %230 = vrot.lane.b32.xlu1 %v196_v51, %s1286_s10 }
  0xb8   :  { %248 = vrot.lane.b32.xlu1 %v197_v38, %s1286_s10 }
  0xf2   :  { %v183_v16 = vpop.permute.xlu0 %182 }
  0xf3   :  { %234 = vrot.lane.b32.xlu1 %v183_v16, %s1286_s10  ;;  %v198_v57 = vsel %vm151_vm0, %v183_v16, %v179_v45 }
  0xf4   :  { %232 = vrot.lane.b32.xlu0 %v198_v57, %s1286_s10 }
  0xf6   :  { %v185_v6 = vpop.permute.xlu1 %184 }
  0xf7   :  { %252 = vrot.lane.b32.xlu1 %v185_v6, %s1286_s10  ;;  %v199_v2 = vsel %vm151_vm0, %v185_v6, %v181_v58 }
  0xf8   :  { %250 = vrot.lane.b32.xlu0 %v199_v2, %s1286_s10 }
  0xfa   :  { %v225_v7 = vpop.permute.xlu0 %224 }
  0xfb   :  { %347 = vrot.lane.b32.xlu1 %v1480_v17, %s1285_s0 }
  0xfc   :  { %331 = vrot.lane.b32.xlu0 %v1471_v14, %s1285_s0 }
  0xfe   :  { %v1759_v10 = vpop.permute.xlu1 %226  ;;  %v243_v12 = vpop.permute.xlu0 %242 }
  0xff   :  { %v258_v15 = vsel %vm254_vm1, %v225_v7, %v1759_v10 }
 0x100   :  { %v290_v18 = vadd.f32 %v258_v15, %v1391_v44  ;;  %v360_v44 = vsel %vm349_vm2, %v340_v4, %v1747_v5 }
 0x102   :  { %v383_v20 = vadd.f32 %v353_v19, %v290_v18  ;;  %v1766_v21 = vpop.permute.xlu1 %244  ;;  %v223_v17 = vpop.permute.xlu0 %222 }
 0x103   :  { %v266_v14 = vsel %vm254_vm1, %v243_v12, %v1766_v21  ;;  %v257_v22 = vsel %vm254_vm1, %v223_v17, %v225_v7 }
 0x104   :  { %1228 = vtanh.f32 %v383_v20  ;;  %v298_v25 = vadd.f32 %v266_v14, %v1389_v43  ;;  %v289_v26 = vadd.f32 %v257_v22, %v1353_v23 }
 0x106   :  { %v391_v27 = vadd.f32 %v360_v44, %v298_v25  ;;  %v241_v28 = vpop.permute.xlu1 %240  ;;  %v322_v29 = vpop.permute.xlu0 %321 }
 0x107   :  { %v265_v32 = vsel %vm254_vm1, %v241_v28, %v243_v12  ;;  %v352_v33 = vsel %vm349_vm2, %v322_v29, %v324_v62 }
 0x108   :  { %1230 = vtanh.f32 %v391_v27  ;;  %v297_v34 = vadd.f32 %v265_v32, %v1367_v30  ;;  %v382_v35 = vadd.f32 %v352_v33, %v289_v26 }
 0x10a   :  { %1232 = vtanh.f32 %v382_v35  ;;  %v338_v36 = vpop.permute.xlu1 %337  ;;  %v320_v37 = vpop.permute.xlu0 %319 }
 0x10b   :  { %v359_v43 = vsel %vm349_vm2, %v338_v36, %v340_v4  ;;  %v351_v45 = vsel %vm349_vm2, %v320_v37, %v322_v29 }
 0x10c   :  { %v390_v23 = vadd.f32 %v359_v43, %v297_v34 }
 0x10e   :  { %v1229_v40 = vpop.eup %1228  ;;  %1234 = vtanh.f32 %v390_v23  ;;  %v336_v41 = vpop.permute.xlu1 %335 }
 0x10f   :  { %v221_v42 = vpop.permute.xlu0 %220  ;;  %v430_v47 = vrot.slane %v1229_v40, 4  ;;  %v358_v13 = vsel %vm349_vm2, %v336_v41, %v338_v36 }
 0x110   :  { %v256_v46 = vsel %vm254_vm1, %v221_v42, %v223_v17 }
 0x111   :  { %v288_v48 = vadd.f32 %v256_v46, %v1429_v1  ;;  %v431_v39 = vadd.f32 %v1229_v40, %v430_v47  ;;  %v608_v46 = vld [vmem:[%s2059_s2 + $0x308] sm:$0xff] }
 0x112   :  { %v1231_v30 = vpop.eup %1230  ;;  %v239_v51 = vpop.permute.xlu1 %238 }
 0x113   :  { %v381_v50 = vadd.f32 %v351_v45, %v288_v48  ;;  %v219_v53 = vpop.permute.xlu0 %218  ;;  %v264_v54 = vsel %vm254_vm1, %v239_v51, %v241_v28  ;;  %v432_v58 = vrot.slane %v431_v39, 2  ;;  %v480_v60 = vrot.slane %v1231_v30, 4 }
 0x114   :  { %v255_v56 = vsel %vm254_vm1, %v219_v53, %v221_v42  ;;  %v1233_v38 = vpop.eup %1232  ;;  %v296_v62 = vadd.f32 %v264_v54, %v1427_v0 }
 0x115   :  { %1236 = vtanh.f32 %v381_v50  ;;  %v433_v4 = vadd.f32 %v432_v58, %v431_v39  ;;  %v481_v16 = vadd.f32 %v1231_v30, %v480_v60  ;;  %v424_v1 = vrot.slane %v1233_v38, 4  ;;  %v610_v58 = vld [vmem:[%s2059_s2 + $0x318] sm:$0xff] }
 0x116   :  { %v389_v57 = vadd.f32 %v358_v13, %v296_v62  ;;  %v287_v6 = vadd.f32 %v255_v56, %v1355_v24  ;;  %v237_v2 = vpop.permute.xlu1 %236  ;;  %v609_v56 = vld [vmem:[%s2059_s2 + $0x310] sm:$0xff] }
 0x117   :  { %v318_v7 = vpop.permute.xlu0 %317  ;;  %v263_v12 = vsel %vm254_vm1, %v237_v2, %v239_v51  ;;  %v482_v18 = vrot.slane %v481_v16, 2  ;;  %v425_v17 = vadd.f32 %v1233_v38, %v424_v1  ;;  %v434_v14 = vrot.slane %v433_v4, 1  ;;  %v611_v1 = vld [vmem:[%s2059_s2 + $0x320] sm:$0xff] }
 0x118   :  { %v350_v15 = vsel %vm349_vm2, %v318_v7, %v320_v37  ;;  %v1235_v19 = vpop.eup %1234  ;;  %1238 = vtanh.f32 %v389_v57  ;;  %v295_v25 = vadd.f32 %v263_v12, %v1369_v31  ;;  %v612_v57 = vld [vmem:[%s2059_s2 + $0x328] sm:$0xff] }
 0x119   :  { %v380_v20 = vadd.f32 %v350_v15, %v287_v6  ;;  %v483_v22 = vadd.f32 %v482_v18, %v481_v16  ;;  %v474_v0 = vrot.slane %v1235_v19, 4  ;;  %v426_v24 = vrot.slane %v425_v17, 2 }
 0x11a   :  { %v334_v26 = vpop.permute.xlu1 %333  ;;  %v435_v34 = vadd.f32 %v434_v14, %v433_v4  ;;  %v1182_v18 = vpack.c.bf16 %v610_v58, %v609_v56 }
 0x11b   :  { %1240 = vtanh.f32 %v380_v20  ;;  %v1790_v44 = vpop.permute.xlu0 %327  ;;  %v357_v27 = vsel %vm349_vm2, %v334_v26, %v336_v41  ;;  %v484_v28 = vrot.slane %v483_v22, 1  ;;  %v475_v29 = vadd.f32 %v1235_v19, %v474_v0  ;;  %v607_v41 = vld [vmem:[%s2059_s2 + $0x300] sm:$0xff] }
 0x11c   :  { %v388_v32 = vadd.f32 %v357_v27, %v295_v25  ;;  %v427_v33 = vadd.f32 %v426_v24, %v425_v17  ;;  %v1179_v54 = vpack.c.bf16 %v608_v46, %v607_v41  ;;  %v1185_v26 = vpack.c.bf16 %v612_v57, %v611_v1  ;;  %v617_v1 = vld [vmem:[%s2059_s2 + $0x350] sm:$0xff]  ;;  %v618_v57 = vld [vmem:[%s2059_s2 + $0x358] sm:$0xff] }
 0x11d   :  { %v485_v35 = vadd.f32 %v484_v28, %v483_v22  ;;  %v476_v36 = vrot.slane %v475_v29, 2 }
 0x11e   :  { %1242 = vtanh.f32 %v388_v32  ;;  %v1793_v43 = vpop.permute.xlu1 %329  ;;  %v428_v40 = vrot.slane %v427_v33, 1 }
 0x11f   :  { %v1237_v37 = vpop.eup %1236  ;;  %v344_v31 = vpop.permute.xlu0 %343  ;;  %v664_v23 = vsel %vm660_vm3, %v485_v35, %v435_v34  ;;  %v477_v42 = vadd.f32 %v476_v36, %v475_v29  ;;  %v355_v6 = vsel %vm349_vm2, %v1790_v44, %v1793_v43 }
 0x120   :  { %812 = vmatprep.mubr.f32.mxu1 %v664_v23  ;;  %v418_v45 = vrot.slane %v1237_v37, 4  ;;  %v429_v50 = vadd.f32 %v428_v40, %v427_v33  ;;  %v361_v0 = vsel %vm349_vm2, %v1747_v5, %v344_v31  ;;  %v354_v23 = vsel %vm349_vm2, %v1745_v63, %v1790_v44  ;;  %v576_v63 = vld [vmem:[%s2059_s2 + $0x208] sm:$0xff]  ;;  %v615_v44 = vld [vmem:[%s2059_s2 + $0x340] sm:$0xff] }
 0x121   :  { %v478_v47 = vrot.slane %v477_v42, 1 }
 0x122   :  { %v1239_v48 = vpop.eup %1238  ;;  %v1802_v39 = vpop.permute.xlu1 %345  ;;  %v419_v13 = vadd.f32 %v1237_v37, %v418_v45  ;;  %v613_v37 = vld [vmem:[%s2059_s2 + $0x330] sm:$0xff] }
 0x123   :  { %v229_v30 = vpop.permute.xlu0 %228  ;;  %v479_v51 = vadd.f32 %v478_v47, %v477_v42  ;;  %v468_v53 = vrot.slane %v1239_v48, 4 }
 0x124   :  { %v420_v38 = vrot.slane %v419_v13, 2  ;;  %v259_v2 = vsel %vm254_vm1, %v1759_v10, %v229_v30 }
 0x125   :  { %v1241_v60 = vpop.eup %1240  ;;  %v663_v62 = vsel %vm660_vm3, %v479_v51, %v429_v50  ;;  %v469_v4 = vadd.f32 %v1239_v48, %v468_v53  ;;  %v291_v32 = vadd.f32 %v259_v2, %v1403_v52  ;;  %v616_v50 = vld [vmem:[%s2059_s2 + $0x348] sm:$0xff]  ;;  %v593_v53 = vld [vmem:[%s2059_s2 + $0x290] sm:$0xff]  ;;  %v595_v2 = vld [vmem:[%s2059_s2 + $0x2a0] sm:$0xff] }
 0x126   :  { %v412_v16 = vrot.slane %v1241_v60, 4  ;;  %v1822_v7 = vpop.permute.xlu1 %230  ;;  %813 = vmatmul.mubr.f32.vlgmr.msra.gmra.mrb[0].mxu1 %v663_v62  ;;  %v421_v15 = vadd.f32 %v420_v38, %v419_v13  ;;  %v577_v38 = vld [vmem:[%s2059_s2 + $0x210] sm:$0xff]  ;;  %v1191_v62 = vpack.c.bf16 %v616_v50, %v615_v44 }
 0x127   :  { %v247_v12 = vpop.permute.xlu0 %246  ;;  %v260_v19 = vsel %vm254_vm1, %v229_v30, %v1822_v7  ;;  %v470_v17 = vrot.slane %v469_v4, 2  ;;  %1180 = vmatpush1.bf16.msra.mxu1 %v1179_v54  ;;  %v384_v41 = vadd.f32 %v354_v23, %v291_v32  ;;  %v594_v54 = vld [vmem:[%s2059_s2 + $0x298] sm:$0xff] }
 0x128   :  { %v267_v20 = vsel %vm254_vm1, %v1766_v21, %v247_v12  ;;  %v413_v14 = vadd.f32 %v1241_v60, %v412_v16  ;;  %v1243_v22 = vpop.eup %1242  ;;  %v292_v10 = vadd.f32 %v260_v19, %v1442_v8  ;;  %1181 = vmatprep.subr.bf16.mxu1 %v1287_v61  ;;  %v422_v24 = vrot.slane %v421_v15, 1  ;;  %v578_v16 = vld [vmem:[%s2059_s2 + $0x218] sm:$0xff]  ;;  %v579_v19 = vld [vmem:[%s2059_s2 + $0x220] sm:$0xff] }
 0x129   :  { %v299_v25 = vadd.f32 %v267_v20, %v1400_v49  ;;  %v471_v27 = vadd.f32 %v470_v17, %v469_v4  ;;  %v462_v29 = vrot.slane %v1243_v22, 4  ;;  %v362_v21 = vsel %vm349_vm2, %v344_v31, %v1802_v39  ;;  %v614_v31 = vld [vmem:[%s2059_s2 + $0x338] sm:$0xff] }
 0x12a   :  { %v414_v28 = vrot.slane %v413_v14, 2  ;;  %v385_v33 = vadd.f32 %v355_v6, %v292_v10  ;;  %v1836_v35 = vpop.permute.xlu1 %248  ;;  %v423_v40 = vadd.f32 %v422_v24, %v421_v15  ;;  %v1188_v47 = vpack.c.bf16 %v614_v31, %v613_v37  ;;  %v620_v10 = vld [vmem:[%s2059_s2 + $0x368] sm:$0xff]  ;;  %v598_v24 = vld [vmem:[%s2059_s2 + $0x2b8] sm:$0xff]  ;;  %v599_v31 = vld [vmem:[%s2059_s2 + $0x2c0] sm:$0xff] }
 0x12b   :  { %v392_v34 = vadd.f32 %v361_v0, %v299_v25  ;;  %v268_v8 = vsel %vm254_vm1, %v247_v12, %v1836_v35  ;;  %v472_v49 = vrot.slane %v471_v27, 1  ;;  %v463_v36 = vadd.f32 %v1243_v22, %v462_v29  ;;  %1183 = vmatpush1.bf16.msra.mxu1 %v1182_v18  ;;  %v596_v12 = vld [vmem:[%s2059_s2 + $0x2a8] sm:$0xff]  ;;  %v619_v0 = vld [vmem:[%s2059_s2 + $0x360] sm:$0xff]  ;;  %v622_v37 = vld [vmem:[%s2059_s2 + $0x378] sm:$0xff] }
 0x12c   :  { %v415_v5 = vadd.f32 %v414_v28, %v413_v14  ;;  %1244 = vtanh.f32 %v385_v33  ;;  %v300_v52 = vadd.f32 %v268_v8, %v1444_v9  ;;  %1184 = vmatprep.subr.bf16.mxu1 %v1287_v61  ;;  %v575_v9 = vld [vmem:[%s2059_s2 + $0x200] sm:$0xff]  ;;  %v1150_v4 = vpack.c.bf16 %v594_v54, %v593_v53  ;;  %v580_v22 = vld [vmem:[%s2059_s2 + $0x228] sm:$0xff]  ;;  %v602_v53 = vld [vmem:[%s2059_s2 + $0x2d8] sm:$0xff] }
 0x12d   :  { %v473_v42 = vadd.f32 %v472_v49, %v471_v27  ;;  %v464_v45 = vrot.slane %v463_v36, 2  ;;  %1246 = vtanh.f32 %v392_v34  ;;  %v1148_v60 = vpack.c.bf16 %v576_v63, %v575_v9  ;;  %v623_v9 = vld [vmem:[%s2059_s2 + $0x380] sm:$0xff]  ;;  %v624_v63 = vld [vmem:[%s2059_s2 + $0x388] sm:$0xff] }
 0x12e   :  { %v393_v46 = vadd.f32 %v362_v21, %v300_v52  ;;  %v416_v30 = vrot.slane %v415_v5, 1  ;;  %v1152_v18 = vpack.c.bf16 %v578_v16, %v577_v38  ;;  %v1194_v17 = vpack.c.bf16 %v618_v57, %v617_v1  ;;  %v581_v21 = vld [vmem:[%s2059_s2 + $0x230] sm:$0xff]  ;;  %v600_v52 = vld [vmem:[%s2059_s2 + $0x2c8] sm:$0xff]  ;;  %v586_v16 = vld [vmem:[%s2059_s2 + $0x258] sm:$0xff] }
 0x12f   :  { %v662_v48 = vsel %vm660_vm3, %v473_v42, %v423_v40  ;;  %v465_v13 = vadd.f32 %v464_v45, %v463_v36  ;;  %1186 = vmatpush1.bf16.msra.mxu1 %v1185_v26  ;;  %v1154_v14 = vpack.c.bf16 %v596_v12, %v595_v2  ;;  %v597_v26 = vld [vmem:[%s2059_s2 + $0x2b0] sm:$0xff]  ;;  %v1156_v29 = vpack.c.bf16 %v580_v22, %v579_v19  ;;  %v626_v57 = vld [vmem:[%s2059_s2 + $0x398] sm:$0xff]  ;;  %v603_v12 = vld [vmem:[%s2059_s2 + $0x2e0] sm:$0xff] }
 0x130   :  { %1248 = vtanh.f32 %v393_v46  ;;  %742 = vmatprep.mubr.f32.mxu0 %v662_v48  ;;  %1187 = vmatprep.subr.bf16.mxu1 %v1287_v61  ;;  %v417_v56 = vadd.f32 %v416_v30, %v415_v5  ;;  %v1197_v34 = vpack.c.bf16 %v620_v10, %v619_v0  ;;  %v1158_v49 = vpack.c.bf16 %v598_v24, %v597_v26  ;;  %v582_v5 = vld [vmem:[%s2059_s2 + $0x238] sm:$0xff]  ;;  %v621_v36 = vld [vmem:[%s2059_s2 + $0x370] sm:$0xff]  ;;  %v588_v10 = vld [vmem:[%s2059_s2 + $0x268] sm:$0xff] }
 0x131   :  { %v466_v51 = vrot.slane %v465_v13, 1  ;;  %1250 = vtanh.f32 %v384_v41  ;;  %v1160_v45 = vpack.c.bf16 %v582_v5, %v581_v21  ;;  %v583_v41 = vld [vmem:[%s2059_s2 + $0x240] sm:$0xff]  ;;  %v1200_v48 = vpack.c.bf16 %v622_v37, %v621_v36  ;;  %v625_v1 = vld [vmem:[%s2059_s2 + $0x390] sm:$0xff]  ;;  %v628_v26 = vld [vmem:[%s2059_s2 + $0x3a8] sm:$0xff] }
 0x132   :  { %v1162_v30 = vpack.c.bf16 %v600_v52, %v599_v31  ;;  %v1206_v22 = vpack.c.bf16 %v626_v57, %v625_v1  ;;  %v605_v24 = vld [vmem:[%s2059_s2 + $0x2f0] sm:$0xff]  ;;  %v630_v5 = vld [vmem:[%s2059_s2 + $0x3b8] sm:$0xff] }
 0x133   :  { %v467_v58 = vadd.f32 %v466_v51, %v465_v13  ;;  %1189 = vmatpush1.bf16.msra.mxu1 %v1188_v47  ;;  %v584_v13 = vld [vmem:[%s2059_s2 + $0x248] sm:$0xff]  ;;  %v601_v51 = vld [vmem:[%s2059_s2 + $0x2d0] sm:$0xff] }
 0x134   :  { %1190 = vmatprep.subr.bf16.mxu1 %v1287_v61  ;;  %v589_v21 = vld [vmem:[%s2059_s2 + $0x270] sm:$0xff] }
 0x135   :  { %v661_v6 = vsel %vm660_vm3, %v467_v58, %v417_v56  ;;  %v1164_v56 = vpack.c.bf16 %v584_v13, %v583_v41  ;;  %v635_v13 = vld [vmem:[%s2059_s2 + $0x3e0] sm:$0xff] }
 0x136   :  { %v1245_v15 = vpop.eup %1244  ;;  %743 = vmatmul.mubr.f32.vlgmr.msra.gmra.mrb[0].mxu0 %v661_v6 }
 0x137   :  { %1149 = vmatpush3.bf16.msra.mxu0 %v1148_v60  ;;  %v442_v20 = vrot.slane %v1245_v15, 4  ;;  %1192 = vmatpush1.bf16.msra.mxu1 %v1191_v62  ;;  %v1247_v25 = vpop.eup %1246  ;;  %v585_v60 = vld [vmem:[%s2059_s2 + $0x250] sm:$0xff]  ;;  %v1203_v62 = vpack.c.bf16 %v624_v63, %v623_v9  ;;  %v636_v9 = vld [vmem:[%s2059_s2 + $0x3e8] sm:$0xff] }
 0x138   :  { %1151 = vmatprep.subr.bf16.mxu0 %v1150_v4  ;;  %1193 = vmatprep.subr.bf16.mxu1 %v1287_v61  ;;  %v486_v42 = vrot.slane %v1247_v25, 4  ;;  %v1166_v4 = vpack.c.bf16 %v602_v53, %v601_v51  ;;  %v1221_v63 = vpack.c.bf16 %v636_v9, %v635_v13 }
 0x139   :  { %v443_v27 = vadd.f32 %v1245_v15, %v442_v20  ;;  %v604_v15 = vld [vmem:[%s2059_s2 + $0x2e8] sm:$0xff]  ;;  %v1168_v20 = vpack.c.bf16 %v586_v16, %v585_v60 }
 0x13a   :  { %v1249_v28 = vpop.eup %1248  ;;  %v487_v54 = vadd.f32 %v1247_v25, %v486_v42  ;;  %v1170_v0 = vpack.c.bf16 %v604_v15, %v603_v12  ;;  %v627_v25 = vld [vmem:[%s2059_s2 + $0x3a0] sm:$0xff] }
 0x13b   :  { %1153 = vmatpush3.bf16.msra.mxu0 %v1152_v18  ;;  %v444_v32 = vrot.slane %v443_v27, 2  ;;  %v492_v33 = vrot.slane %v1249_v28, 4  ;;  %1195 = vmatpush1.bf16.msra.mxu1 %v1194_v17  ;;  %v1251_v8 = vpop.eup %1250  ;;  %v587_v17 = vld [vmem:[%s2059_s2 + $0x260] sm:$0xff] }
 0x13c   :  { %1155 = vmatprep.subr.bf16.mxu0 %v1154_v14  ;;  %1196 = vmatprep.subr.bf16.mxu1 %v1287_v61  ;;  %v436_v47 = vrot.slane %v1251_v8, 4  ;;  %v488_v18 = vrot.slane %v487_v54, 2 }
 0x13d   :  { %v445_v23 = vadd.f32 %v444_v32, %v443_v27  ;;  %v493_v40 = vadd.f32 %v1249_v28, %v492_v33  ;;  %v606_v27 = vld [vmem:[%s2059_s2 + $0x2f8] sm:$0xff]  ;;  %v1209_v33 = vpack.c.bf16 %v628_v26, %v627_v25 }
 0x13e   :  { %v437_v38 = vadd.f32 %v1251_v8, %v436_v47  ;;  %v489_v28 = vadd.f32 %v488_v18, %v487_v54  ;;  %v590_v8 = vld [vmem:[%s2059_s2 + $0x278] sm:$0xff] }
 0x13f   :  { %1157 = vmatpush3.bf16.msra.mxu0 %v1156_v29  ;;  %v494_v46 = vrot.slane %v493_v40, 2  ;;  %1198 = vmatpush1.bf16.msra.mxu1 %v1197_v34  ;;  %v446_v44 = vrot.slane %v445_v23, 1  ;;  %v1172_v29 = vpack.c.bf16 %v588_v10, %v587_v17  ;;  %v1174_v34 = vpack.c.bf16 %v606_v27, %v605_v24  ;;  %v634_v47 = vld [vmem:[%s2059_s2 + $0x3d8] sm:$0xff] }
 0x140   :  { %1159 = vmatprep.subr.bf16.mxu0 %v1158_v49  ;;  %1199 = vmatprep.subr.bf16.mxu1 %v1287_v61  ;;  %v438_v14 = vrot.slane %v437_v38, 2  ;;  %v629_v49 = vld [vmem:[%s2059_s2 + $0x3b0] sm:$0xff]  ;;  %v490_v36 = vrot.slane %v489_v28, 1  ;;  %v1176_v37 = vpack.c.bf16 %v590_v8, %v589_v21 }
 0x141   :  { %v495_v50 = vadd.f32 %v494_v46, %v493_v40  ;;  %v447_v6 = vadd.f32 %v446_v44, %v445_v23  ;;  %v1212_v52 = vpack.c.bf16 %v630_v5, %v629_v49  ;;  %v631_v23 = vld [vmem:[%s2059_s2 + $0x3c0] sm:$0xff]  ;;  %v632_v40 = vld [vmem:[%s2059_s2 + $0x3c8] sm:$0xff]  ;;  %v633_v46 = vld [vmem:[%s2059_s2 + $0x3d0] sm:$0xff] }
 0x142   :  { %v439_v32 = vadd.f32 %v438_v14, %v437_v38  ;;  %v491_v42 = vadd.f32 %v490_v36, %v489_v28  ;;  %v1215_v41 = vpack.c.bf16 %v632_v40, %v631_v23 }
 0x143   :  { %1161 = vmatpush3.bf16.msra.mxu0 %v1160_v45  ;;  %v496_v58 = vrot.slane %v495_v50, 1  ;;  %1201 = vmatpush1.bf16.msra.mxu1 %v1200_v48 }
 0x144   :  { %1163 = vmatprep.subr.bf16.mxu0 %v1162_v30  ;;  %1202 = vmatprep.subr.bf16.mxu1 %v1287_v61  ;;  %v440_v31 = vrot.slane %v439_v32, 1  ;;  %v1218_v30 = vpack.c.bf16 %v634_v47, %v633_v46 }
 0x145   :  { %v497_v2 = vadd.f32 %v496_v58, %v495_v50 }
 0x146   :  { %v441_v45 = vadd.f32 %v440_v31, %v439_v32 }
 0x147   :  { %1165 = vmatpush3.bf16.msra.mxu0 %v1164_v56  ;;  %v666_v19 = vsel %vm660_vm3, %v497_v2, %v447_v6  ;;  %1204 = vmatpush1.bf16.msra.mxu1 %v1203_v62 }
 0x148   :  { %882 = vmatprep.mubr.f32.mxu0 %v666_v19  ;;  %1167 = vmatprep.subr.bf16.mxu0 %v1166_v4  ;;  %v665_v48 = vsel %vm660_vm3, %v491_v42, %v441_v45 }
 0x149   :  { %1205 = vmatprep.subr.bf16.mxu1 %v1287_v61 }
 0x14b   :  { %1169 = vmatpush3.bf16.msra.mxu0 %v1168_v20  ;;  %1207 = vmatpush1.bf16.msra.mxu1 %v1206_v22 }
 0x14c   :  { %1171 = vmatprep.subr.bf16.mxu0 %v1170_v0  ;;  %1208 = vmatprep.subr.bf16.mxu1 %v1287_v61 }
 0x14f   :  { %1173 = vmatpush3.bf16.msra.mxu0 %v1172_v29  ;;  %1210 = vmatpush1.bf16.msra.mxu1 %v1209_v33 }
 0x150   :  { %1175 = vmatprep.subr.bf16.mxu0 %v1174_v34  ;;  %1211 = vmatprep.subr.bf16.mxu1 %v1287_v61 }
 0x153   :  { %1177 = vmatpush3.bf16.msra.mxu0 %v1176_v37  ;;  %1213 = vmatpush1.bf16.msra.mxu1 %v1212_v52 }
 0x154   :  { %1214 = vmatprep.subr.bf16.mxu1 %v1287_v61 }
 0x156   :  { %883 = vmatmul.mubr.f32.vlgmr.msra.gmra.mrb[2].mxu0 %v665_v48 }
 0x157   :  { %1216 = vmatpush1.bf16.msra.mxu1 %v1215_v41  ;;  %v975_v41 = vld [vmem:[%s2060_s3] ss:$0 sm:$0xff] }
 0x158   :  { %1217 = vmatprep.subr.bf16.mxu1 %v1287_v61 }
 0x15b   :  { %1219 = vmatpush1.bf16.msra.mxu1 %v1218_v30 }
 0x15c   :  { %1220 = vmatprep.subr.bf16.mxu1 %v1287_v61 }
 0x15f   :  { %1222 = vmatpush1.bf16.msra.mxu1 %v1221_v63 }
 0x165   :  { %v235_v44 = vpop.permute.xlu1 %234 }
 0x166   :  { %v233_v50 = vpop.permute.xlu0 %232 }
 0x167   :  { %v262_v53 = vsel %vm254_vm1, %v233_v50, %v235_v44  ;;  %v261_v56 = vsel %vm254_vm1, %v1822_v7, %v233_v50 }
 0x168   :  { %v294_v4 = vadd.f32 %v262_v53, %v1407_v55  ;;  %v293_v16 = vadd.f32 %v261_v56, %v1450_v11 }
 0x169   :  { %v253_v51 = vpop.permute.xlu1 %252 }
 0x16a   :  { %v251_v54 = vpop.permute.xlu0 %250 }
 0x16b   :  { %v269_v58 = vsel %vm254_vm1, %v1836_v35, %v251_v54  ;;  %v270_v60 = vsel %vm254_vm1, %v251_v54, %v253_v51 }
 0x16c   :  { %v301_v38 = vadd.f32 %v269_v58, %v1452_v3  ;;  %v302_v62 = vadd.f32 %v270_v60, %v1416_v59 }
 0x16d   :  { %v348_v61 = vpop.permute.xlu1 %347 }
 0x16e   :  { %v363_v1 = vsel %vm349_vm2, %v1802_v39, %v348_v61  ;;  %v395_v57 = vadd.f32 %v348_v61, %v302_v62  ;;  %v332_v6 = vpop.permute.xlu0 %331 }
 0x16f   :  { %v394_v7 = vadd.f32 %v363_v1, %v301_v38  ;;  %v356_v35 = vsel %vm349_vm2, %v1793_v43, %v332_v6  ;;  %v387_v2 = vadd.f32 %v332_v6, %v294_v4 }
 0x170   :  { %1252 = vtanh.f32 %v395_v57  ;;  %v386_v12 = vadd.f32 %v356_v35, %v293_v16 }
 0x171   :  { %1254 = vtanh.f32 %v394_v7 }
 0x172   :  { %1256 = vtanh.f32 %v386_v12 }
 0x173   :  { %1258 = vtanh.f32 %v387_v2 }
 0x17a   :  { %v1253_v59 = vpop.eup %1252 }
 0x17b   :  { %v1255_v55 = vpop.eup %1254  ;;  %v504_v11 = vsel %vm454_vm4, %v1253_v59, 0.0 }
 0x17c   :  { %v1257_v3 = vpop.eup %1256  ;;  %v505_v15 = vrot.slane %v504_v11, 4  ;;  %v498_v39 = vrot.slane %v1255_v55, 4 }
 0x17d   :  { %v1259_v18 = vpop.eup %1258  ;;  %v448_v19 = vrot.slane %v1257_v3, 4 }
 0x17e   :  { %v455_v20 = vsel %vm454_vm4, %v1259_v18, 0.0  ;;  %v506_v17 = vadd.f32 %v505_v15, %v504_v11  ;;  %v499_v43 = vadd.f32 %v1255_v55, %v498_v39 }
 0x17f   :  { %v456_v14 = vrot.slane %v455_v20, 4  ;;  %v449_v22 = vadd.f32 %v1257_v3, %v448_v19 }
 0x180   :  { %v507_v0 = vrot.slane %v506_v17, 2  ;;  %v500_v10 = vrot.slane %v499_v43, 2 }
 0x181   :  { %v457_v25 = vadd.f32 %v456_v14, %v455_v20  ;;  %v450_v26 = vrot.slane %v449_v22, 2 }
 0x182   :  { %v508_v24 = vadd.f32 %v507_v0, %v506_v17  ;;  %v501_v27 = vadd.f32 %v500_v10, %v499_v43 }
 0x183   :  { %v458_v28 = vrot.slane %v457_v25, 2  ;;  %v451_v29 = vadd.f32 %v450_v26, %v449_v22 }
 0x184   :  { %v509_v21 = vrot.slane %v508_v24, 1  ;;  %v502_v32 = vrot.slane %v501_v27, 1 }
 0x185   :  { %v459_v33 = vadd.f32 %v458_v28, %v457_v25  ;;  %v452_v34 = vrot.slane %v451_v29, 1 }
 0x186   :  { %v503_v8 = vadd.f32 %v502_v32, %v501_v27  ;;  %v510_v5 = vadd.f32 %v509_v21, %v508_v24 }
 0x187   :  { %v460_v49 = vrot.slane %v459_v33, 1  ;;  %v453_v36 = vadd.f32 %v452_v34, %v451_v29 }
 0x189   :  { %v461_v37 = vadd.f32 %v460_v49, %v459_v33  ;;  %v667_v31 = vsel %vm660_vm3, %v503_v8, %v453_v36 }
 0x18b   :  { %v668_v52 = vsel %vm660_vm3, %v510_v5, %v461_v37 }
 0x18c   :  { %976 = vmatprep.mubr.msk.f32.mxu1 %vm454_vm4, %v668_v52 }
 0x18d   :  { %953 = vmatmul.mubr.f32.vlgmr.msra.gmra.mrb[2].mxu1 %v667_v31 }
 0x1f9   :  { %v1044_v23 = vpop.f32.mrb[0].mxu1 }
 0x1fa   :  { %v1045_v40 = vpop.f32.mrb[1].mxu1 }
 0x1fb   :  { %v1046_v42 = vadd.f32 %v1045_v40, %v1044_v23 }
 0x209   :  { %v1009_v45 = vpop.f32.mrb[0].mxu0 }
 0x20a   :  { %v1010_v46 = vpop.f32.mrb[1].mxu0 }
 0x20b   :  { %v1011_v47 = vadd.f32 %v1010_v46, %v1009_v45 }
 0x20d   :  { %v745_v48 = vadd.f32 %v1011_v47, %v975_v41 }
 0x20f   :  { %v815_v30 = vadd.f32 %v1046_v42, %v745_v48 }
 0x229   :  { %v1079_v13 = vpop.f32.mrb[2].mxu0 }
 0x22a   :  { %v1080_v9 = vpop.f32.mrb[3].mxu0 }
 0x22b   :  { %v1081_v63 = vadd.f32 %v1080_v9, %v1079_v13 }
 0x22d   :  { %v885_v44 = vadd.f32 %v1081_v63, %v815_v30 }
 0x260   :  { %v954_v50 = vpop.f32.mrb[2].mxu1 }
 0x261   :  { %v955_v51 = vadd.f32 %v954_v50, %v885_v44  ;;  %v956_v53 = vpop.f32.mrb[3].mxu1 }
 0x263   :  { %959 = vst.msk [vmem:[#allocation2] sm:$0x3] %vm958_vm5, %v955_v51 }
 0x264   :  { %1271 = shalt.err (!%p1268_p4)
}
 0x265   :  { %s1272_s12 = scalar_lea.hbm %s2061_s4, 32 }
 0x266   :  { %p1273_p5 = scmp.ne.s32.totalorder %s2061_s4, %s1272_s12  ;;  %p1276_p6 = scmp.lt.u32.totalorder %s1272_s12, %s2061_s4 }
 0x268   :  { %p1278_p7 = pnand %p1276_p6, %p1273_p5 }
 0x26a   :  { %1281 = shalt.err (!%p1278_p7)
}
 0x26b   :  { %969 = dma.vmem_to_hbm [thread:$0]  %s967_s6, 32, %s2061_s4, [#allocation3]  }
 0x26c   :  { %1282 = dma.done.wait [#allocation3], 32  }
 0x26d   :  { %1283 = vsyncadd [#allocation3], 4294967264 }
 0x26e   :  { %973 = vsyncpa [#allocation3], 1 }

// kernel: tpu_custom_call.1
= control target key start
LH: loop header
LB: loop body
LE: loop exit
PB: predicated region body
PF: predicated region fallthrough
CT: control target
= control target key end

     0   :  { %v443_v7 = vmov 0.0|0.0   ;;  %vm444_vm0 = vmmov 0   ;;  %v445_v13 = vmov 0.0   ;;  %s637_s0 = inlined_call_operand.vmem [shape: f32[2,8,336], index: 0, kind: input, shape index: {}]   ;;  %s638_s1 = inlined_call_operand.vmem [shape: f32[336,10], index: 1, kind: input, shape index: {}]   ;;  %s639_s2 = inlined_call_operand.vmem [shape: f32[1,10], index: 2, kind: input, shape index: {}]   ;;  %s640_s3 = inlined_call_operand.hbm [shape: f32[2,10], index: 3, kind: output, shape index: {}]  }
   0x1   :  { %v82_v0 = vld [vmem:[%s638_s1 + $0x80] sm:$0xff]  ;;  %v83_v1 = vld [vmem:[%s638_s1 + $0x88] sm:$0xff]  ;;  %v84_v5 = vld [vmem:[%s638_s1 + $0x90] sm:$0xff]  ;;  %388 = vmatprep.subr.bf16.mxu1 %v443_v7  ;;  %353 = vmatprep.mubr.msk.f32.mxu1 %vm444_vm0, %v445_v13 }
   0x2   :  { %v66_v2 = vld [vmem:[%s638_s1] sm:$0xff]  ;;  %v356_v3 = vpack.c.bf16 %v83_v1, %v82_v0  ;;  %v67_v4 = vld [vmem:[%s638_s1 + $0x8] sm:$0xff]  ;;  %v85_v6 = vld [vmem:[%s638_s1 + $0x98] sm:$0xff] }
   0x3   :  { %v358_v8 = vpack.c.bf16 %v67_v4, %v66_v2  ;;  %v360_v9 = vpack.c.bf16 %v85_v6, %v84_v5  ;;  %v68_v10 = vld [vmem:[%s638_s1 + $0x10] sm:$0xff]  ;;  %v69_v11 = vld [vmem:[%s638_s1 + $0x18] sm:$0xff]  ;;  %v86_v12 = vld [vmem:[%s638_s1 + $0xa0] sm:$0xff] }
   0x4   :  { %357 = vmatprep.subr.bf16.mxu0 %v356_v3  ;;  %v87_v14 = vld [vmem:[%s638_s1 + $0xa8] sm:$0xff]  ;;  %v362_v15 = vpack.c.bf16 %v69_v11, %v68_v10  ;;  %v70_v17 = vld [vmem:[%s638_s1 + $0x20] sm:$0xff]  ;;  %v88_v19 = vld [vmem:[%s638_s1 + $0xb0] sm:$0xff] }
   0x5   :  { %359 = vmatpush3.bf16.msra.mxu0 %v358_v8  ;;  %v364_v16 = vpack.c.bf16 %v87_v14, %v86_v12  ;;  %v71_v18 = vld [vmem:[%s638_s1 + $0x28] sm:$0xff]  ;;  %v89_v20 = vld [vmem:[%s638_s1 + $0xb8] sm:$0xff]  ;;  %v98_v21 = vld [vmem:[%s638_s1 + $0x100] sm:$0xff] }
   0x6   :  { %361 = vmatprep.subr.bf16.mxu0 %v360_v9  ;;  %v99_v22 = vld [vmem:[%s638_s1 + $0x108] sm:$0xff]  ;;  %v366_v23 = vpack.c.bf16 %v71_v18, %v70_v17  ;;  %v100_v25 = vld [vmem:[%s638_s1 + $0x110] sm:$0xff]  ;;  %v368_v26 = vpack.c.bf16 %v89_v20, %v88_v19  ;;  %v73_v28 = vld [vmem:[%s638_s1 + $0x38] sm:$0xff] }
   0x7   :  { %v389_v24 = vpack.c.bf16 %v99_v22, %v98_v21  ;;  %v72_v27 = vld [vmem:[%s638_s1 + $0x30] sm:$0xff]  ;;  %v101_v29 = vld [vmem:[%s638_s1 + $0x118] sm:$0xff]  ;;  %v90_v30 = vld [vmem:[%s638_s1 + $0xc0] sm:$0xff] }
   0x8   :  { %v91_v31 = vld [vmem:[%s638_s1 + $0xc8] sm:$0xff]  ;;  %v392_v32 = vpack.c.bf16 %v101_v29, %v100_v25  ;;  %v102_v33 = vld [vmem:[%s638_s1 + $0x120] sm:$0xff]  ;;  %v370_v35 = vpack.c.bf16 %v73_v28, %v72_v27  ;;  %v92_v39 = vld [vmem:[%s638_s1 + $0xd0] sm:$0xff] }
   0x9   :  { %363 = vmatpush3.bf16.msra.mxu0 %v362_v15  ;;  %390 = vmatpush3.bf16.msra.mxu1 %v389_v24  ;;  %v103_v34 = vld [vmem:[%s638_s1 + $0x128] sm:$0xff]  ;;  %v74_v36 = vld [vmem:[%s638_s1 + $0x40] sm:$0xff]  ;;  %v372_v38 = vpack.c.bf16 %v91_v31, %v90_v30  ;;  %v93_v42 = vld [vmem:[%s638_s1 + $0xd8] sm:$0xff] }
   0xa   :  { %365 = vmatprep.subr.bf16.mxu0 %v364_v16  ;;  %391 = vmatprep.subr.bf16.mxu1 %v443_v7  ;;  %v75_v37 = vld [vmem:[%s638_s1 + $0x48] sm:$0xff]  ;;  %v19_v41 = vld [vmem:[%s637_s0 + $0x20] sm:$0xff]  ;;  %v395_v43 = vpack.c.bf16 %v103_v34, %v102_v33  ;;  %v18_v45 = vld [vmem:[%s637_s0 + $0x18] sm:$0xff] }
   0xb   :  { %v16_v40 = vld [vmem:[%s637_s0 + $0x8] sm:$0xff]  ;;  %v15_v44 = vld [vmem:[%s637_s0] sm:$0xff]  ;;  %v104_v46 = vld [vmem:[%s638_s1 + $0x130] sm:$0xff]  ;;  %v374_v49 = vpack.c.bf16 %v75_v37, %v74_v36 }
   0xc   :  { %407 = vtanh.f32 %v16_v40  ;;  %v105_v47 = vld [vmem:[%s638_s1 + $0x138] sm:$0xff]  ;;  %v17_v48 = vld [vmem:[%s637_s0 + $0x10] sm:$0xff]  ;;  %v20_v50 = vld [vmem:[%s637_s0 + $0x28] sm:$0xff] }
   0xd   :  { %367 = vmatpush3.bf16.msra.mxu0 %v366_v23  ;;  %393 = vmatpush3.bf16.msra.mxu1 %v392_v32  ;;  %409 = vtanh.f32 %v19_v41 }
   0xe   :  { %369 = vmatprep.subr.bf16.mxu0 %v368_v26  ;;  %394 = vmatprep.subr.bf16.mxu1 %v443_v7  ;;  %411 = vtanh.f32 %v15_v44 }
  0x11   :  { %371 = vmatpush3.bf16.msra.mxu0 %v370_v35 }
  0x12   :  { %8 = vsyncpa [#allocation3], 0  ;;  %373 = vmatprep.subr.bf16.mxu0 %v372_v38  ;;  %v376_v51 = vpack.c.bf16 %v93_v42, %v92_v39  ;;  %v76_v52 = vld [vmem:[%s638_s1 + $0x50] sm:$0xff]  ;;  %v77_v53 = vld [vmem:[%s638_s1 + $0x58] sm:$0xff]  ;;  %413 = vtanh.f32 %v18_v45  ;;  %396 = vmatpush3.bf16.msra.mxu1 %v395_v43  ;;  %v398_v56 = vpack.c.bf16 %v105_v47, %v104_v46  ;;  %vm39_vm1 = vcmask 654336   ;;  %s446_s27 = smov [#allocation2]  }
  0x13   :  { %v94_v54 = vld [vmem:[%s638_s1 + $0xe0] sm:$0xff]  ;;  %v95_v55 = vld [vmem:[%s638_s1 + $0xe8] sm:$0xff]  ;;  %415 = vtanh.f32 %v17_v48  ;;  %397 = vmatprep.subr.bf16.mxu1 %v443_v7  ;;  %v378_v59 = vpack.c.bf16 %v77_v53, %v76_v52  ;;  %v96_v63 = vld [vmem:[%s638_s1 + $0xf0] sm:$0xff]  ;;  %vm121_vm2 = vcmask 1041409   ;;  %s277_s28 = sshll.u32 %s446_s27, 4  ;;  %vm269_vm3 = vcmask 74752   ;;  %s278_s28 = int_to_ptr.vmem [resolvable:$true] %s277_s28 }
  0x14   :  { %v106_v57 = vld [vmem:[%s638_s1 + $0x140] sm:$0xff]  ;;  %v107_v58 = vld [vmem:[%s638_s1 + $0x148] sm:$0xff]  ;;  %417 = vtanh.f32 %v20_v50  ;;  %v380_v60 = vpack.c.bf16 %v95_v55, %v94_v54  ;;  %v97_v0 = vld [vmem:[%s638_s1 + $0xf8] sm:$0xff]  ;;  %s419_s29 = scalar_lea.vmem %s278_s28, 32  ;;  %p424_p1 = scmp.lt.s32.totalorder %s278_s28, %s278_s28 }
  0x15   :  { %375 = vmatpush3.bf16.msra.mxu0 %v374_v49  ;;  %v78_v61 = vld [vmem:[%s638_s1 + $0x60] sm:$0xff]  ;;  %v79_v62 = vld [vmem:[%s638_s1 + $0x68] sm:$0xff]  ;;  %v401_v1 = vpack.c.bf16 %v107_v58, %v106_v57  ;;  %v384_v5 = vpack.c.bf16 %v97_v0, %v96_v63  ;;  %v80_v6 = vld [vmem:[%s638_s1 + $0x70] sm:$0xff]  ;;  %p420_p0 = scmp.ne.s32.totalorder %s278_s28, %s419_s29  ;;  %p425_p2 = scmp.lt.s32.totalorder %s419_s29, %s419_s29 }
  0x16   :  { %377 = vmatprep.subr.bf16.mxu0 %v376_v51  ;;  %399 = vmatpush3.bf16.msra.mxu1 %v398_v56  ;;  %v408_v2 = vpop.eup %407  ;;  %v382_v3 = vpack.c.bf16 %v79_v62, %v78_v61  ;;  %v81_v8 = vld [vmem:[%s638_s1 + $0x78] sm:$0xff]  ;;  %v285_v56 = vld [vmem:[%s639_s2] ss:$0 sm:$0xff] }
  0x17   :  { %400 = vmatprep.subr.bf16.mxu1 %v443_v7  ;;  %v410_v4 = vpop.eup %409  ;;  %v33_v9 = vrot.slane %v408_v2, 4  ;;  %v386_v15 = vpack.c.bf16 %v81_v8, %v80_v6  ;;  %p426_p3 = por %p425_p2, %p424_p1 }
  0x18   :  { %v412_v10 = vpop.eup %411  ;;  %v53_v11 = vrot.slane %v410_v4, 4 }
  0x19   :  { %379 = vmatpush3.bf16.msra.mxu0 %v378_v59  ;;  %v34_v12 = vadd.f32 %v408_v2, %v33_v9  ;;  %v27_v13 = vrot.slane %v412_v10, 4  ;;  %p427_p4 = pnand %p426_p3, %p420_p0 }
  0x1a   :  { %381 = vmatprep.subr.bf16.mxu0 %v380_v60  ;;  %402 = vmatpush3.bf16.msra.mxu1 %v401_v1  ;;  %v54_v16 = vadd.f32 %v410_v4, %v53_v11 }
  0x1b   :  { %v35_v19 = vrot.slane %v34_v12, 2  ;;  %v28_v20 = vadd.f32 %v412_v10, %v27_v13 }
  0x1c   :  { %v414_v7 = vpop.eup %413  ;;  %v55_v22 = vrot.slane %v54_v16, 2 }
  0x1d   :  { %v416_v14 = vpop.eup %415  ;;  %383 = vmatpush3.bf16.msra.mxu0 %v382_v3  ;;  %v47_v17 = vrot.slane %v414_v7, 4  ;;  %v36_v26 = vadd.f32 %v35_v19, %v34_v12  ;;  %v29_v27 = vrot.slane %v28_v20, 2 }
  0x1e   :  { %v418_v18 = vpop.eup %417  ;;  %385 = vmatprep.subr.bf16.mxu0 %v384_v5  ;;  %v40_v21 = vsel %vm39_vm1, %v416_v14, 0.0  ;;  %v56_v29 = vadd.f32 %v55_v22, %v54_v16 }
  0x1f   :  { %v48_v23 = vadd.f32 %v414_v7, %v47_v17  ;;  %v41_v24 = vrot.slane %v40_v21, 4  ;;  %v59_v25 = vsel %vm39_vm1, %v418_v18, 0.0  ;;  %v37_v32 = vrot.slane %v36_v26, 1 }
  0x20   :  { %v60_v28 = vrot.slane %v59_v25, 4  ;;  %v30_v33 = vadd.f32 %v29_v27, %v28_v20  ;;  %v57_v35 = vrot.slane %v56_v29, 1 }
  0x21   :  { %387 = vmatpush3.bf16.msra.mxu0 %v386_v15  ;;  %v49_v30 = vrot.slane %v48_v23, 2  ;;  %v42_v31 = vadd.f32 %v41_v24, %v40_v21  ;;  %v38_v38 = vadd.f32 %v37_v32, %v36_v26 }
  0x22   :  { %v61_v34 = vadd.f32 %v60_v28, %v59_v25  ;;  %v31_v39 = vrot.slane %v30_v33, 1  ;;  %v58_v41 = vadd.f32 %v57_v35, %v56_v29 }
  0x23   :  { %v50_v36 = vadd.f32 %v49_v30, %v48_v23  ;;  %v43_v37 = vrot.slane %v42_v31, 2 }
  0x24   :  { %v62_v40 = vrot.slane %v61_v34, 2  ;;  %v32_v44 = vadd.f32 %v31_v39, %v30_v33  ;;  %v123_v46 = vsel %vm121_vm2, %v58_v41, %v38_v38 }
  0x25   :  { %v51_v42 = vrot.slane %v50_v36, 1  ;;  %v44_v43 = vadd.f32 %v43_v37, %v42_v31  ;;  %193 = vmatprep.mubr.f32.mxu0 %v123_v46 }
  0x26   :  { %v63_v45 = vadd.f32 %v62_v40, %v61_v34 }
  0x27   :  { %v52_v47 = vadd.f32 %v51_v42, %v50_v36  ;;  %v45_v48 = vrot.slane %v44_v43, 1 }
  0x28   :  { %v64_v49 = vrot.slane %v63_v45, 1 }
  0x29   :  { %v122_v50 = vsel %vm121_vm2, %v52_v47, %v32_v44  ;;  %v46_v51 = vadd.f32 %v45_v48, %v44_v43 }
  0x2a   :  { %194 = vmatmul.mubr.f32.vlgmr.msra.gmra.mrb[0].mxu0 %v122_v50  ;;  %v65_v52 = vadd.f32 %v64_v49, %v63_v45 }
  0x2c   :  { %v124_v53 = vsel %vm121_vm2, %v65_v52, %v46_v51 }
  0x2d   :  { %354 = vmatmul.mubr.msk.f32.vlgmr.msra.gmra.mrb[0].mxu1 %vm39_vm1, %v124_v53 }
  0xfd   :  { %v319_v54 = vpop.f32.mrb[0].mxu0 }
  0xfe   :  { %v320_v55 = vpop.f32.mrb[1].mxu0 }
  0xff   :  { %v321_v57 = vadd.f32 %v320_v55, %v319_v54 }
 0x100   :  { %v265_v58 = vpop.f32.mrb[0].mxu1 }
 0x101   :  { %v196_v59 = vadd.f32 %v321_v57, %v285_v56  ;;  %v355_v60 = vpop.f32.mrb[1].mxu1 }
 0x103   :  { %v266_v61 = vadd.f32 %v265_v58, %v196_v59 }
 0x105   :  { %270 = vst.msk [vmem:[#allocation2] sm:$0x3] %vm269_vm3, %v266_v61 }
 0x106   :  { %430 = shalt.err (!%p427_p4)
}
 0x107   :  { %s431_s2 = scalar_lea.hbm %s640_s3, 32 }
 0x108   :  { %p432_p5 = scmp.ne.s32.totalorder %s640_s3, %s431_s2  ;;  %p435_p6 = scmp.lt.u32.totalorder %s431_s2, %s640_s3 }
 0x10a   :  { %p437_p7 = pnand %p435_p6, %p432_p5 }
 0x10c   :  { %440 = shalt.err (!%p437_p7)
}
 0x10d   :  { %280 = dma.vmem_to_hbm [thread:$0]  %s278_s28, 32, %s640_s3, [#allocation3]  }
 0x10e   :  { %441 = dma.done.wait [#allocation3], 32  }
 0x10f   :  { %442 = vsyncadd [#allocation3], 4294967264 }
 0x110   :  { %284 = vsyncpa [#allocation3], 1 }

</bundles_post_ra>
